<compile_context>
chip_gen: v7x
topology: tpu7x:2x2x1
jax: 0.10.0
libtpu: 0.0.40
codegen_flags: <defaults>
</compile_context>

<pallas_src>
import functools

import jax
import jax.numpy as jnp
from jax.experimental import pallas as pl
from jax.experimental.pallas import tpu as pltpu  # noqa: F401  (TPU backend)


# ----------------------------------------------------------------------------
# Fused LSTM + k-max pooling + FC kernel (single invocation, everything in VMEM)
# ----------------------------------------------------------------------------
def lstm_text_kernel(x_ref, wih_ref, whh_ref, b_ref,
                     w1_ref, b1_ref, w2_ref, b2_ref, out_ref):
    T, R, _ = x_ref.shape          # R = 2*batch  (rows: [text1 batch | text2 batch])
    H = wih_ref.shape[1] // 8      # per-direction hidden size
    C2 = 2 * H                     # bidirectional channel count
    B = R // 2
    k = w1_ref.shape[0] // (2 * C2)  # kmax pooling size

    w_ih = wih_ref[...]            # (2E, 8H)  block-diagonal over (fwd, bwd)
    w_hh = whh_ref[...]            # (2H, 8H)
    bias = b_ref[...]              # (1, 8H)

    # ---- input projections: independent of the recurrence (off the serial path)
    gx = []
    for t in range(T):
        xb = jnp.concatenate([x_ref[t], x_ref[T - 1 - t]], axis=-1)     # (R, 2E)
        gx.append(jnp.dot(xb, w_ih, preferred_element_type=jnp.float32) + bias)

    # ---- fused fwd+bwd recurrence over both texts --------------------------------
    # gate column layout: [i_f, i_b, f_f, f_b, o_f, o_b, g_f, g_b]  (each H wide)
    h = jnp.zeros((R, C2), jnp.float32)       # [h_fwd | h_bwd]
    c = jnp.zeros((R, C2), jnp.float32)
    h_f = [None] * T
    h_b = [None] * T
    for t in range(T):
        gates = gx[t] + jnp.dot(h, w_hh, preferred_element_type=jnp.float32)  # (R, 8H)
        sg = jax.nn.sigmoid(gates[:, :6 * H])       # i / f / o gates (both dirs)
        gg = jnp.tanh(gates[:, 6 * H:])             # g gate (both dirs)
        ig = sg[:, 0 * C2:1 * C2]
        fg = sg[:, 1 * C2:2 * C2]
        og = sg[:, 2 * C2:3 * C2]
        c = fg * c + ig * gg
        h = og * jnp.tanh(c)
        h_f[t] = h[:, :H]            # forward output belongs to time t
        h_b[T - 1 - t] = h[:, H:]    # backward output belongs to time T-1-t

    # bidirectional output at original time s: [h_fwd(s) | h_bwd(s)]
    h_bi = [jnp.concatenate([h_f[s], h_b[s]], axis=-1) for s in range(T)]  # (R, 2H)

    # ---- k-max pooling along time, restored to original time order ----------------
    # rank_t = #{s: v_s > v_t} + #{s < t: v_s == v_t}  -> distinct per element
    ranks = []
    for t in range(T):
        r = jnp.zeros((R, C2), jnp.float32)
        for s in range(T):
            if s == t:
                continue
            cmp = (h_bi[s] >= h_bi[t]) if s < t else (h_bi[s] > h_bi[t])
            r = r + cmp.astype(jnp.float32)
        ranks.append(r)
    sel = [ranks[t] < k for t in range(T)]          # "is among top-k" masks

    pooled = []
    for j in range(k):
        acc = jnp.zeros((R, C2), jnp.float32)
        pos = jnp.zeros((R, C2), jnp.float32)       # #selected indices before t
        for t in range(T):
            take = jnp.logical_and(sel[t], pos == j)
            acc = acc + jnp.where(take, h_bi[t], 0.0)
            pos = pos + sel[t].astype(jnp.float32)
        pooled.append(acc)                          # (R, 2H): j-th (in time order)

    # kernel-native feature layout: (text, slot j, channel); w1 rows pre-permuted.
    pieces = [pooled[j][tau * B:(tau + 1) * B, :] for tau in range(2) for j in range(k)]
    x_fc = jnp.concatenate(pieces, axis=-1)         # (B, 4*H*k)

    # ---- FC head: Linear (+ folded eval BatchNorm) -> ReLU -> Linear --------------
    hfc = jnp.dot(x_fc, w1_ref[...], preferred_element_type=jnp.float32) + b1_ref[...]
    hfc = jnp.maximum(hfc, 0.0)
    out_ref[...] = (jnp.dot(hfc, w2_ref[...], preferred_element_type=jnp.float32)
                    + b2_ref[...])


def lstm_text_forward(text1, text2, fused, embedding):
    """text1/text2: (B, T) int32 token ids. Returns logits (B, C)."""
    B = text1.shape[0]
    C = fused["w2"].shape[1]
    tok = jnp.concatenate([text1, text2], axis=0)          # (2B, T)
    x_all = jnp.take(embedding, tok.T, axis=0)             # (T, 2B, E), time-major
    return pl.pallas_call(
        lstm_text_kernel,
        out_shape=jax.ShapeDtypeStruct((B, C), jnp.float32),
    )(x_all, fused["w_ih"], fused["w_hh"], fused["b"],
      fused["w1"], fused["b1"], fused["w2"], fused["b2"])


# ----------------------------------------------------------------------------
# Host-side parameter fusion (done once, plain JAX).
# ----------------------------------------------------------------------------
def prepare_fused_params(p, kmax):
    E = p["w_ih_f"].shape[0]
    H = p["w_hh_f"].shape[0]
    C2 = 2 * H
    f32 = jnp.float32

    def split_gates(w):  # stored gate order: (i, f, g, o), each H wide
        return w[..., 0:H], w[..., H:2 * H], w[..., 2 * H:3 * H], w[..., 3 * H:4 * H]

    # Block-diagonal fused input weights: rows [0:E)=x_fwd, [E:2E)=x_bwd.
    i_f, f_f, g_f, o_f = split_gates(p["w_ih_f"])
    i_b, f_b, g_b, o_b = split_gates(p["w_ih_b"])
    ze = jnp.zeros((E, H), f32)
    w_ih = jnp.concatenate([
        jnp.concatenate([i_f, ze, f_f, ze, o_f, ze, g_f, ze], axis=1),
        jnp.concatenate([ze, i_b, ze, f_b, ze, o_b, ze, g_b], axis=1),
    ], axis=0)                                              # (2E, 8H)

    # Block-diagonal fused recurrent weights: rows [0:H)=h_fwd, [H:2H)=h_bwd.
    i_f, f_f, g_f, o_f = split_gates(p["w_hh_f"])
    i_b, f_b, g_b, o_b = split_gates(p["w_hh_b"])
    zh = jnp.zeros((H, H), f32)
    w_hh = jnp.concatenate([
        jnp.concatenate([i_f, zh, f_f, zh, o_f, zh, g_f, zh], axis=1),
        jnp.concatenate([zh, i_b, zh, f_b, zh, o_b, zh, g_b], axis=1),
    ], axis=0)                                              # (2H, 8H)

    bi_f, bf_f, bg_f, bo_f = split_gates(p["b_f"])
    bi_b, bf_b, bg_b, bo_b = split_gates(p["b_b"])
    b = jnp.concatenate([bi_f, bi_b, bf_f, bf_b, bo_f, bo_b, bg_f, bg_b], axis=1)

    # Fold eval-mode BatchNorm into the first Linear.
    scale = p["gamma"] * jax.lax.rsqrt(p["var"] + 1e-5)     # (1, L)
    w1 = p["w1"] * scale
    b1 = (p["b1"] - p["mean"]) * scale + p["beta"]

    # Row-permute w1: PyTorch feature order (text, channel, slot) ->
    # kernel feature order (text, slot, channel).
    perm = jnp.array([tau * C2 * kmax + c * kmax + j
                      for tau in range(2) for j in range(kmax) for c in range(C2)],
                     dtype=jnp.int32)
    w1 = w1[perm, :]

    return {"w_ih": w_ih, "w_hh": w_hh, "b": b,
            "w1": w1, "b1": b1, "w2": p["w2"], "b2": p["b2"]}


# ----------------------------------------------------------------------------
# Pure-JAX reference (unfused, for correctness check).
# ----------------------------------------------------------------------------
def kmax_pooling(x, k):
    """x: (B, C, T); top-k values along last axis, kept in original order."""
    _, idx = jax.lax.top_k(x, k)
    idx_sorted = jnp.sort(idx, axis=-1)
    return jnp.take_along_axis(x, idx_sorted, axis=-1)


def lstm_onedir_ref(x, w_ih, w_hh, b):
    T, B, E = x.shape
    H = w_hh.shape[0]
    b = b[0]

    def step(carry, xt):
        h, c = carry
        gates = xt @ w_ih + h @ w_hh + b
        i = jax.nn.sigmoid(gates[:, 0 * H:1 * H])
        f = jax.nn.sigmoid(gates[:, 1 * H:2 * H])
        g = jnp.tanh(gates[:, 2 * H:3 * H])
        o = jax.nn.sigmoid(gates[:, 3 * H:4 * H])
        c = f * c + i * g
        h = o * jnp.tanh(c)
        return (h, c), h

    init = (jnp.zeros((B, H), jnp.float32), jnp.zeros((B, H), jnp.float32))
    _, hs = jax.lax.scan(step, init, x)
    return hs


def forward_ref(text1, text2, p, kmax):
    emb = p["embedding"]

    def bi(x_tbe):
        hf = lstm_onedir_ref(x_tbe, p["w_ih_f"], p["w_hh_f"], p["b_f"])
        hb = lstm_onedir_ref(x_tbe[::-1], p["w_ih_b"], p["w_hh_b"], p["b_b"])[::-1]
        return jnp.concatenate([hf, hb], axis=-1)

    e1 = jnp.take(emb, text1, axis=0)
    e2 = jnp.take(emb, text2, axis=0)
    h1 = bi(jnp.transpose(e1, (1, 0, 2)))
    h2 = bi(jnp.transpose(e2, (1, 0, 2)))
    t1 = kmax_pooling(jnp.transpose(h1, (1, 2, 0)), kmax)
    t2 = kmax_pooling(jnp.transpose(h2, (1, 2, 0)), kmax)
    x = jnp.concatenate([t1, t2], axis=1).reshape(text1.shape[0], -1)
    h = x @ p["w1"] + p["b1"]
    h = (h - p["mean"]) * jax.lax.rsqrt(p["var"] + 1e-5) * p["gamma"] + p["beta"]
    h = jnp.maximum(h, 0.0)
    return h @ p["w2"] + p["b2"]


# ----------------------------------------------------------------------------
# Deterministic parameter init (synthetic, shapes per the module's __init__).
# ----------------------------------------------------------------------------
def init_params(key, vocab, E, H, kmax, L, C):
    keys = jax.random.split(key, 12)
    s = 0.1
    F = kmax * (H * 2 * 2)
    return {
        "embedding": s * jax.random.normal(keys[0], (vocab, E), jnp.float32),
        # LSTM (single layer, bidirectional); weights stored transposed for x @ W,
        # gate order (i, f, g, o); b_ih + b_hh folded into a single bias.
        "w_ih_f": s * jax.random.normal(keys[1], (E, 4 * H), jnp.float32),
        "w_hh_f": s * jax.random.normal(keys[2], (H, 4 * H), jnp.float32),
        "b_f":    s * jax.random.normal(keys[3], (1, 4 * H), jnp.float32),
        "w_ih_b": s * jax.random.normal(keys[4], (E, 4 * H), jnp.float32),
        "w_hh_b": s * jax.random.normal(keys[5], (H, 4 * H), jnp.float32),
        "b_b":    s * jax.random.normal(keys[6], (1, 4 * H), jnp.float32),
        # fc: Linear(F, L) -> BN(L) -> ReLU -> Linear(L, C)
        "w1":    s * jax.random.normal(keys[7], (F, L), jnp.float32),
        "b1":    s * jax.random.normal(keys[8], (1, L), jnp.float32),
        "gamma": 1.0 + s * jax.random.normal(keys[9], (1, L), jnp.float32),
        "beta":  s * jax.random.normal(keys[10], (1, L), jnp.float32),
        "mean":  jnp.zeros((1, L), jnp.float32),
        "var":   jnp.ones((1, L), jnp.float32),
        "w2":    s * jax.random.normal(keys[11], (L, C), jnp.float32),
        "b2":    jnp.zeros((1, C), jnp.float32),
    }


if __name__ == "__main__":
    # Small, module-consistent config.
    B, T = 2, 8            # batch, sequence length
    VOCAB, E = 50, 32      # word_size / embedding_dim
    H = 32                 # hidden_size
    KMAX = 2               # opt.kmax_pooling
    L = 64                 # linear_hidden_size
    C = 4                  # num_classes

    key = jax.random.PRNGKey(0)
    kp, k1, k2 = jax.random.split(key, 3)
    params = init_params(kp, VOCAB, E, H, KMAX, L, C)
    fused = prepare_fused_params(params, KMAX)

    text1 = jax.random.randint(k1, (B, T), 0, VOCAB, dtype=jnp.int32)
    text2 = jax.random.randint(k2, (B, T), 0, VOCAB, dtype=jnp.int32)

    fwd = jax.jit(lstm_text_forward)
    logits = jax.block_until_ready(fwd(text1, text2, fused, params["embedding"]))

    ref = jax.block_until_ready(forward_ref(text1, text2, params, KMAX))
    assert logits.shape == (B, C)
    assert bool(jnp.all(jnp.isfinite(logits)))
    assert bool(jnp.allclose(logits, ref, atol=5e-3, rtol=5e-3)), (
        f"max abs diff {float(jnp.max(jnp.abs(logits - ref)))}")

    print("KERNEL_OK")
</pallas_src>

<mosaic_0001>
module attributes {stable_mosaic.version = 11 : i64} {
  func.func @lstm_text_kernel(%arg0: memref<8x4x32xf32, #tpu.memory_space<vmem>>, %arg1: memref<64x256xf32, #tpu.memory_space<vmem>>, %arg2: memref<64x256xf32, #tpu.memory_space<vmem>>, %arg3: memref<1x256xf32, #tpu.memory_space<vmem>>, %arg4: memref<256x64xf32, #tpu.memory_space<vmem>>, %arg5: memref<1x64xf32, #tpu.memory_space<vmem>>, %arg6: memref<64x4xf32, #tpu.memory_space<vmem>>, %arg7: memref<1x4xf32, #tpu.memory_space<vmem>>, %arg8: memref<2x4xf32, #tpu.memory_space<vmem>>) attributes {dimension_semantics = [], scalar_prefetch = 0 : i64, scratch_operands = 0 : i64, tpu.core_type = #tpu.core_type<tc>} {
    %c0 = arith.constant 0 : index
    %c0_0 = arith.constant 0 : index
    %0 = vector.load %arg1[%c0, %c0_0] : memref<64x256xf32, #tpu.memory_space<vmem>>, vector<64x256xf32>
    %c0_1 = arith.constant 0 : index
    %c0_2 = arith.constant 0 : index
    %1 = vector.load %arg2[%c0_1, %c0_2] : memref<64x256xf32, #tpu.memory_space<vmem>>, vector<64x256xf32>
    %c0_3 = arith.constant 0 : index
    %c0_4 = arith.constant 0 : index
    %2 = vector.load %arg3[%c0_3, %c0_4] : memref<1x256xf32, #tpu.memory_space<vmem>>, vector<1x256xf32>
    %c0_5 = arith.constant 0 : index
    %c0_6 = arith.constant 0 : index
    %c0_7 = arith.constant 0 : index
    %3 = vector.load %arg0[%c0_5, %c0_6, %c0_7] : memref<8x4x32xf32, #tpu.memory_space<vmem>>, vector<1x4x32xf32>
    %4 = vector.shape_cast %3 : vector<1x4x32xf32> to vector<4x32xf32>
    %c7 = arith.constant 7 : index
    %c0_8 = arith.constant 0 : index
    %c0_9 = arith.constant 0 : index
    %5 = vector.load %arg0[%c7, %c0_8, %c0_9] : memref<8x4x32xf32, #tpu.memory_space<vmem>>, vector<1x4x32xf32>
    %6 = vector.shape_cast %5 : vector<1x4x32xf32> to vector<4x32xf32>
    %7 = tpu.concatenate %4, %6 in 1 : vector<4x32xf32>, vector<4x32xf32> -> vector<4x64xf32>
    %cst = arith.constant dense<0.000000e+00> : vector<4x256xf32>
    %8 = tpu.matmul %7, %0, %cst {dimension_numbers = #tpu.dot_dimension_numbers<[1], [0], [0], [1], [0, 0, 1, 1], [], []>} : vector<4x64xf32>, vector<64x256xf32>, vector<4x256xf32> -> vector<4x256xf32>
    %9 = vector.broadcast %2 : vector<1x256xf32> to vector<4x256xf32>
    %10 = arith.addf %8, %9 : vector<4x256xf32>
    %c1 = arith.constant 1 : index
    %c0_10 = arith.constant 0 : index
    %c0_11 = arith.constant 0 : index
    %11 = vector.load %arg0[%c1, %c0_10, %c0_11] : memref<8x4x32xf32, #tpu.memory_space<vmem>>, vector<1x4x32xf32>
    %12 = vector.shape_cast %11 : vector<1x4x32xf32> to vector<4x32xf32>
    %c6 = arith.constant 6 : index
    %c0_12 = arith.constant 0 : index
    %c0_13 = arith.constant 0 : index
    %13 = vector.load %arg0[%c6, %c0_12, %c0_13] : memref<8x4x32xf32, #tpu.memory_space<vmem>>, vector<1x4x32xf32>
    %14 = vector.shape_cast %13 : vector<1x4x32xf32> to vector<4x32xf32>
    %15 = tpu.concatenate %12, %14 in 1 : vector<4x32xf32>, vector<4x32xf32> -> vector<4x64xf32>
    %cst_14 = arith.constant dense<0.000000e+00> : vector<4x256xf32>
    %16 = tpu.matmul %15, %0, %cst_14 {dimension_numbers = #tpu.dot_dimension_numbers<[1], [0], [0], [1], [0, 0, 1, 1], [], []>} : vector<4x64xf32>, vector<64x256xf32>, vector<4x256xf32> -> vector<4x256xf32>
    %17 = vector.broadcast %2 : vector<1x256xf32> to vector<4x256xf32>
    %18 = arith.addf %16, %17 : vector<4x256xf32>
    %c2 = arith.constant 2 : index
    %c0_15 = arith.constant 0 : index
    %c0_16 = arith.constant 0 : index
    %19 = vector.load %arg0[%c2, %c0_15, %c0_16] : memref<8x4x32xf32, #tpu.memory_space<vmem>>, vector<1x4x32xf32>
    %20 = vector.shape_cast %19 : vector<1x4x32xf32> to vector<4x32xf32>
    %c5 = arith.constant 5 : index
    %c0_17 = arith.constant 0 : index
    %c0_18 = arith.constant 0 : index
    %21 = vector.load %arg0[%c5, %c0_17, %c0_18] : memref<8x4x32xf32, #tpu.memory_space<vmem>>, vector<1x4x32xf32>
    %22 = vector.shape_cast %21 : vector<1x4x32xf32> to vector<4x32xf32>
    %23 = tpu.concatenate %20, %22 in 1 : vector<4x32xf32>, vector<4x32xf32> -> vector<4x64xf32>
    %cst_19 = arith.constant dense<0.000000e+00> : vector<4x256xf32>
    %24 = tpu.matmul %23, %0, %cst_19 {dimension_numbers = #tpu.dot_dimension_numbers<[1], [0], [0], [1], [0, 0, 1, 1], [], []>} : vector<4x64xf32>, vector<64x256xf32>, vector<4x256xf32> -> vector<4x256xf32>
    %25 = vector.broadcast %2 : vector<1x256xf32> to vector<4x256xf32>
    %26 = arith.addf %24, %25 : vector<4x256xf32>
    %c3 = arith.constant 3 : index
    %c0_20 = arith.constant 0 : index
    %c0_21 = arith.constant 0 : index
    %27 = vector.load %arg0[%c3, %c0_20, %c0_21] : memref<8x4x32xf32, #tpu.memory_space<vmem>>, vector<1x4x32xf32>
    %28 = vector.shape_cast %27 : vector<1x4x32xf32> to vector<4x32xf32>
    %c4 = arith.constant 4 : index
    %c0_22 = arith.constant 0 : index
    %c0_23 = arith.constant 0 : index
    %29 = vector.load %arg0[%c4, %c0_22, %c0_23] : memref<8x4x32xf32, #tpu.memory_space<vmem>>, vector<1x4x32xf32>
    %30 = vector.shape_cast %29 : vector<1x4x32xf32> to vector<4x32xf32>
    %31 = tpu.concatenate %28, %30 in 1 : vector<4x32xf32>, vector<4x32xf32> -> vector<4x64xf32>
    %cst_24 = arith.constant dense<0.000000e+00> : vector<4x256xf32>
    %32 = tpu.matmul %31, %0, %cst_24 {dimension_numbers = #tpu.dot_dimension_numbers<[1], [0], [0], [1], [0, 0, 1, 1], [], []>} : vector<4x64xf32>, vector<64x256xf32>, vector<4x256xf32> -> vector<4x256xf32>
    %33 = vector.broadcast %2 : vector<1x256xf32> to vector<4x256xf32>
    %34 = arith.addf %32, %33 : vector<4x256xf32>
    %c4_25 = arith.constant 4 : index
    %c0_26 = arith.constant 0 : index
    %c0_27 = arith.constant 0 : index
    %35 = vector.load %arg0[%c4_25, %c0_26, %c0_27] : memref<8x4x32xf32, #tpu.memory_space<vmem>>, vector<1x4x32xf32>
    %36 = vector.shape_cast %35 : vector<1x4x32xf32> to vector<4x32xf32>
    %c3_28 = arith.constant 3 : index
    %c0_29 = arith.constant 0 : index
    %c0_30 = arith.constant 0 : index
    %37 = vector.load %arg0[%c3_28, %c0_29, %c0_30] : memref<8x4x32xf32, #tpu.memory_space<vmem>>, vector<1x4x32xf32>
    %38 = vector.shape_cast %37 : vector<1x4x32xf32> to vector<4x32xf32>
    %39 = tpu.concatenate %36, %38 in 1 : vector<4x32xf32>, vector<4x32xf32> -> vector<4x64xf32>
    %cst_31 = arith.constant dense<0.000000e+00> : vector<4x256xf32>
    %40 = tpu.matmul %39, %0, %cst_31 {dimension_numbers = #tpu.dot_dimension_numbers<[1], [0], [0], [1], [0, 0, 1, 1], [], []>} : vector<4x64xf32>, vector<64x256xf32>, vector<4x256xf32> -> vector<4x256xf32>
    %41 = vector.broadcast %2 : vector<1x256xf32> to vector<4x256xf32>
    %42 = arith.addf %40, %41 : vector<4x256xf32>
    %c5_32 = arith.constant 5 : index
    %c0_33 = arith.constant 0 : index
    %c0_34 = arith.constant 0 : index
    %43 = vector.load %arg0[%c5_32, %c0_33, %c0_34] : memref<8x4x32xf32, #tpu.memory_space<vmem>>, vector<1x4x32xf32>
    %44 = vector.shape_cast %43 : vector<1x4x32xf32> to vector<4x32xf32>
    %c2_35 = arith.constant 2 : index
    %c0_36 = arith.constant 0 : index
    %c0_37 = arith.constant 0 : index
    %45 = vector.load %arg0[%c2_35, %c0_36, %c0_37] : memref<8x4x32xf32, #tpu.memory_space<vmem>>, vector<1x4x32xf32>
    %46 = vector.shape_cast %45 : vector<1x4x32xf32> to vector<4x32xf32>
    %47 = tpu.concatenate %44, %46 in 1 : vector<4x32xf32>, vector<4x32xf32> -> vector<4x64xf32>
    %cst_38 = arith.constant dense<0.000000e+00> : vector<4x256xf32>
    %48 = tpu.matmul %47, %0, %cst_38 {dimension_numbers = #tpu.dot_dimension_numbers<[1], [0], [0], [1], [0, 0, 1, 1], [], []>} : vector<4x64xf32>, vector<64x256xf32>, vector<4x256xf32> -> vector<4x256xf32>
    %49 = vector.broadcast %2 : vector<1x256xf32> to vector<4x256xf32>
    %50 = arith.addf %48, %49 : vector<4x256xf32>
    %c6_39 = arith.constant 6 : index
    %c0_40 = arith.constant 0 : index
    %c0_41 = arith.constant 0 : index
    %51 = vector.load %arg0[%c6_39, %c0_40, %c0_41] : memref<8x4x32xf32, #tpu.memory_space<vmem>>, vector<1x4x32xf32>
    %52 = vector.shape_cast %51 : vector<1x4x32xf32> to vector<4x32xf32>
    %c1_42 = arith.constant 1 : index
    %c0_43 = arith.constant 0 : index
    %c0_44 = arith.constant 0 : index
    %53 = vector.load %arg0[%c1_42, %c0_43, %c0_44] : memref<8x4x32xf32, #tpu.memory_space<vmem>>, vector<1x4x32xf32>
    %54 = vector.shape_cast %53 : vector<1x4x32xf32> to vector<4x32xf32>
    %55 = tpu.concatenate %52, %54 in 1 : vector<4x32xf32>, vector<4x32xf32> -> vector<4x64xf32>
    %cst_45 = arith.constant dense<0.000000e+00> : vector<4x256xf32>
    %56 = tpu.matmul %55, %0, %cst_45 {dimension_numbers = #tpu.dot_dimension_numbers<[1], [0], [0], [1], [0, 0, 1, 1], [], []>} : vector<4x64xf32>, vector<64x256xf32>, vector<4x256xf32> -> vector<4x256xf32>
    %57 = vector.broadcast %2 : vector<1x256xf32> to vector<4x256xf32>
    %58 = arith.addf %56, %57 : vector<4x256xf32>
    %c7_46 = arith.constant 7 : index
    %c0_47 = arith.constant 0 : index
    %c0_48 = arith.constant 0 : index
    %59 = vector.load %arg0[%c7_46, %c0_47, %c0_48] : memref<8x4x32xf32, #tpu.memory_space<vmem>>, vector<1x4x32xf32>
    %60 = vector.shape_cast %59 : vector<1x4x32xf32> to vector<4x32xf32>
    %c0_49 = arith.constant 0 : index
    %c0_50 = arith.constant 0 : index
    %c0_51 = arith.constant 0 : index
    %61 = vector.load %arg0[%c0_49, %c0_50, %c0_51] : memref<8x4x32xf32, #tpu.memory_space<vmem>>, vector<1x4x32xf32>
    %62 = vector.shape_cast %61 : vector<1x4x32xf32> to vector<4x32xf32>
    %63 = tpu.concatenate %60, %62 in 1 : vector<4x32xf32>, vector<4x32xf32> -> vector<4x64xf32>
    %cst_52 = arith.constant dense<0.000000e+00> : vector<4x256xf32>
    %64 = tpu.matmul %63, %0, %cst_52 {dimension_numbers = #tpu.dot_dimension_numbers<[1], [0], [0], [1], [0, 0, 1, 1], [], []>} : vector<4x64xf32>, vector<64x256xf32>, vector<4x256xf32> -> vector<4x256xf32>
    %65 = vector.broadcast %2 : vector<1x256xf32> to vector<4x256xf32>
    %66 = arith.addf %64, %65 : vector<4x256xf32>
    %cst_53 = arith.constant 0.000000e+00 : f32
    %67 = vector.broadcast %cst_53 : f32 to vector<4x64xf32>
    %cst_54 = arith.constant 0.000000e+00 : f32
    %68 = vector.broadcast %cst_54 : f32 to vector<4x64xf32>
    %cst_55 = arith.constant dense<0.000000e+00> : vector<4x256xf32>
    %69 = tpu.matmul %67, %1, %cst_55 {dimension_numbers = #tpu.dot_dimension_numbers<[1], [0], [0], [1], [0, 0, 1, 1], [], []>} : vector<4x64xf32>, vector<64x256xf32>, vector<4x256xf32> -> vector<4x256xf32>
    %70 = arith.addf %10, %69 : vector<4x256xf32>
    %71 = vector.extract_strided_slice %70 {offsets = [0, 0], sizes = [4, 192], strides = [1, 1]} : vector<4x256xf32> to vector<4x192xf32>
    %72 = arith.negf %71 : vector<4x192xf32>
    %73 = math.exp %72 : vector<4x192xf32>
    %cst_56 = arith.constant 1.000000e+00 : f32
    %74 = vector.broadcast %cst_56 : f32 to vector<4x192xf32>
    %75 = arith.addf %74, %73 : vector<4x192xf32>
    %76 = arith.divf %74, %75 : vector<4x192xf32>
    %77 = vector.extract_strided_slice %70 {offsets = [0, 192], sizes = [4, 64], strides = [1, 1]} : vector<4x256xf32> to vector<4x64xf32>
    %78 = math.tanh %77 : vector<4x64xf32>
    %79 = vector.extract_strided_slice %76 {offsets = [0, 0], sizes = [4, 64], strides = [1, 1]} : vector<4x192xf32> to vector<4x64xf32>
    %80 = vector.extract_strided_slice %76 {offsets = [0, 64], sizes = [4, 64], strides = [1, 1]} : vector<4x192xf32> to vector<4x64xf32>
    %81 = vector.extract_strided_slice %76 {offsets = [0, 128], sizes = [4, 64], strides = [1, 1]} : vector<4x192xf32> to vector<4x64xf32>
    %82 = arith.mulf %80, %68 : vector<4x64xf32>
    %83 = arith.mulf %79, %78 : vector<4x64xf32>
    %84 = arith.addf %82, %83 : vector<4x64xf32>
    %85 = math.tanh %84 : vector<4x64xf32>
    %86 = arith.mulf %81, %85 : vector<4x64xf32>
    %87 = vector.extract_strided_slice %86 {offsets = [0, 0], sizes = [4, 32], strides = [1, 1]} : vector<4x64xf32> to vector<4x32xf32>
    %88 = vector.extract_strided_slice %86 {offsets = [0, 32], sizes = [4, 32], strides = [1, 1]} : vector<4x64xf32> to vector<4x32xf32>
    %cst_57 = arith.constant dense<0.000000e+00> : vector<4x256xf32>
    %89 = tpu.matmul %86, %1, %cst_57 {dimension_numbers = #tpu.dot_dimension_numbers<[1], [0], [0], [1], [0, 0, 1, 1], [], []>} : vector<4x64xf32>, vector<64x256xf32>, vector<4x256xf32> -> vector<4x256xf32>
    %90 = arith.addf %18, %89 : vector<4x256xf32>
    %91 = vector.extract_strided_slice %90 {offsets = [0, 0], sizes = [4, 192], strides = [1, 1]} : vector<4x256xf32> to vector<4x192xf32>
    %92 = arith.negf %91 : vector<4x192xf32>
    %93 = math.exp %92 : vector<4x192xf32>
    %cst_58 = arith.constant 1.000000e+00 : f32
    %94 = vector.broadcast %cst_58 : f32 to vector<4x192xf32>
    %95 = arith.addf %94, %93 : vector<4x192xf32>
    %96 = arith.divf %94, %95 : vector<4x192xf32>
    %97 = vector.extract_strided_slice %90 {offsets = [0, 192], sizes = [4, 64], strides = [1, 1]} : vector<4x256xf32> to vector<4x64xf32>
    %98 = math.tanh %97 : vector<4x64xf32>
    %99 = vector.extract_strided_slice %96 {offsets = [0, 0], sizes = [4, 64], strides = [1, 1]} : vector<4x192xf32> to vector<4x64xf32>
    %100 = vector.extract_strided_slice %96 {offsets = [0, 64], sizes = [4, 64], strides = [1, 1]} : vector<4x192xf32> to vector<4x64xf32>
    %101 = vector.extract_strided_slice %96 {offsets = [0, 128], sizes = [4, 64], strides = [1, 1]} : vector<4x192xf32> to vector<4x64xf32>
    %102 = arith.mulf %100, %84 : vector<4x64xf32>
    %103 = arith.mulf %99, %98 : vector<4x64xf32>
    %104 = arith.addf %102, %103 : vector<4x64xf32>
    %105 = math.tanh %104 : vector<4x64xf32>
    %106 = arith.mulf %101, %105 : vector<4x64xf32>
    %107 = vector.extract_strided_slice %106 {offsets = [0, 0], sizes = [4, 32], strides = [1, 1]} : vector<4x64xf32> to vector<4x32xf32>
    %108 = vector.extract_strided_slice %106 {offsets = [0, 32], sizes = [4, 32], strides = [1, 1]} : vector<4x64xf32> to vector<4x32xf32>
    %cst_59 = arith.constant dense<0.000000e+00> : vector<4x256xf32>
    %109 = tpu.matmul %106, %1, %cst_59 {dimension_numbers = #tpu.dot_dimension_numbers<[1], [0], [0], [1], [0, 0, 1, 1], [], []>} : vector<4x64xf32>, vector<64x256xf32>, vector<4x256xf32> -> vector<4x256xf32>
    %110 = arith.addf %26, %109 : vector<4x256xf32>
    %111 = vector.extract_strided_slice %110 {offsets = [0, 0], sizes = [4, 192], strides = [1, 1]} : vector<4x256xf32> to vector<4x192xf32>
    %112 = arith.negf %111 : vector<4x192xf32>
    %113 = math.exp %112 : vector<4x192xf32>
    %cst_60 = arith.constant 1.000000e+00 : f32
    %114 = vector.broadcast %cst_60 : f32 to vector<4x192xf32>
    %115 = arith.addf %114, %113 : vector<4x192xf32>
    %116 = arith.divf %114, %115 : vector<4x192xf32>
    %117 = vector.extract_strided_slice %110 {offsets = [0, 192], sizes = [4, 64], strides = [1, 1]} : vector<4x256xf32> to vector<4x64xf32>
    %118 = math.tanh %117 : vector<4x64xf32>
    %119 = vector.extract_strided_slice %116 {offsets = [0, 0], sizes = [4, 64], strides = [1, 1]} : vector<4x192xf32> to vector<4x64xf32>
    %120 = vector.extract_strided_slice %116 {offsets = [0, 64], sizes = [4, 64], strides = [1, 1]} : vector<4x192xf32> to vector<4x64xf32>
    %121 = vector.extract_strided_slice %116 {offsets = [0, 128], sizes = [4, 64], strides = [1, 1]} : vector<4x192xf32> to vector<4x64xf32>
    %122 = arith.mulf %120, %104 : vector<4x64xf32>
    %123 = arith.mulf %119, %118 : vector<4x64xf32>
    %124 = arith.addf %122, %123 : vector<4x64xf32>
    %125 = math.tanh %124 : vector<4x64xf32>
    %126 = arith.mulf %121, %125 : vector<4x64xf32>
    %127 = vector.extract_strided_slice %126 {offsets = [0, 0], sizes = [4, 32], strides = [1, 1]} : vector<4x64xf32> to vector<4x32xf32>
    %128 = vector.extract_strided_slice %126 {offsets = [0, 32], sizes = [4, 32], strides = [1, 1]} : vector<4x64xf32> to vector<4x32xf32>
    %cst_61 = arith.constant dense<0.000000e+00> : vector<4x256xf32>
    %129 = tpu.matmul %126, %1, %cst_61 {dimension_numbers = #tpu.dot_dimension_numbers<[1], [0], [0], [1], [0, 0, 1, 1], [], []>} : vector<4x64xf32>, vector<64x256xf32>, vector<4x256xf32> -> vector<4x256xf32>
    %130 = arith.addf %34, %129 : vector<4x256xf32>
    %131 = vector.extract_strided_slice %130 {offsets = [0, 0], sizes = [4, 192], strides = [1, 1]} : vector<4x256xf32> to vector<4x192xf32>
    %132 = arith.negf %131 : vector<4x192xf32>
    %133 = math.exp %132 : vector<4x192xf32>
    %cst_62 = arith.constant 1.000000e+00 : f32
    %134 = vector.broadcast %cst_62 : f32 to vector<4x192xf32>
    %135 = arith.addf %134, %133 : vector<4x192xf32>
    %136 = arith.divf %134, %135 : vector<4x192xf32>
    %137 = vector.extract_strided_slice %130 {offsets = [0, 192], sizes = [4, 64], strides = [1, 1]} : vector<4x256xf32> to vector<4x64xf32>
    %138 = math.tanh %137 : vector<4x64xf32>
    %139 = vector.extract_strided_slice %136 {offsets = [0, 0], sizes = [4, 64], strides = [1, 1]} : vector<4x192xf32> to vector<4x64xf32>
    %140 = vector.extract_strided_slice %136 {offsets = [0, 64], sizes = [4, 64], strides = [1, 1]} : vector<4x192xf32> to vector<4x64xf32>
    %141 = vector.extract_strided_slice %136 {offsets = [0, 128], sizes = [4, 64], strides = [1, 1]} : vector<4x192xf32> to vector<4x64xf32>
    %142 = arith.mulf %140, %124 : vector<4x64xf32>
    %143 = arith.mulf %139, %138 : vector<4x64xf32>
    %144 = arith.addf %142, %143 : vector<4x64xf32>
    %145 = math.tanh %144 : vector<4x64xf32>
    %146 = arith.mulf %141, %145 : vector<4x64xf32>
    %147 = vector.extract_strided_slice %146 {offsets = [0, 0], sizes = [4, 32], strides = [1, 1]} : vector<4x64xf32> to vector<4x32xf32>
    %148 = vector.extract_strided_slice %146 {offsets = [0, 32], sizes = [4, 32], strides = [1, 1]} : vector<4x64xf32> to vector<4x32xf32>
    %cst_63 = arith.constant dense<0.000000e+00> : vector<4x256xf32>
    %149 = tpu.matmul %146, %1, %cst_63 {dimension_numbers = #tpu.dot_dimension_numbers<[1], [0], [0], [1], [0, 0, 1, 1], [], []>} : vector<4x64xf32>, vector<64x256xf32>, vector<4x256xf32> -> vector<4x256xf32>
    %150 = arith.addf %42, %149 : vector<4x256xf32>
    %151 = vector.extract_strided_slice %150 {offsets = [0, 0], sizes = [4, 192], strides = [1, 1]} : vector<4x256xf32> to vector<4x192xf32>
    %152 = arith.negf %151 : vector<4x192xf32>
    %153 = math.exp %152 : vector<4x192xf32>
    %cst_64 = arith.constant 1.000000e+00 : f32
    %154 = vector.broadcast %cst_64 : f32 to vector<4x192xf32>
    %155 = arith.addf %154, %153 : vector<4x192xf32>
    %156 = arith.divf %154, %155 : vector<4x192xf32>
    %157 = vector.extract_strided_slice %150 {offsets = [0, 192], sizes = [4, 64], strides = [1, 1]} : vector<4x256xf32> to vector<4x64xf32>
    %158 = math.tanh %157 : vector<4x64xf32>
    %159 = vector.extract_strided_slice %156 {offsets = [0, 0], sizes = [4, 64], strides = [1, 1]} : vector<4x192xf32> to vector<4x64xf32>
    %160 = vector.extract_strided_slice %156 {offsets = [0, 64], sizes = [4, 64], strides = [1, 1]} : vector<4x192xf32> to vector<4x64xf32>
    %161 = vector.extract_strided_slice %156 {offsets = [0, 128], sizes = [4, 64], strides = [1, 1]} : vector<4x192xf32> to vector<4x64xf32>
    %162 = arith.mulf %160, %144 : vector<4x64xf32>
    %163 = arith.mulf %159, %158 : vector<4x64xf32>
    %164 = arith.addf %162, %163 : vector<4x64xf32>
    %165 = math.tanh %164 : vector<4x64xf32>
    %166 = arith.mulf %161, %165 : vector<4x64xf32>
    %167 = vector.extract_strided_slice %166 {offsets = [0, 0], sizes = [4, 32], strides = [1, 1]} : vector<4x64xf32> to vector<4x32xf32>
    %168 = vector.extract_strided_slice %166 {offsets = [0, 32], sizes = [4, 32], strides = [1, 1]} : vector<4x64xf32> to vector<4x32xf32>
    %cst_65 = arith.constant dense<0.000000e+00> : vector<4x256xf32>
    %169 = tpu.matmul %166, %1, %cst_65 {dimension_numbers = #tpu.dot_dimension_numbers<[1], [0], [0], [1], [0, 0, 1, 1], [], []>} : vector<4x64xf32>, vector<64x256xf32>, vector<4x256xf32> -> vector<4x256xf32>
    %170 = arith.addf %50, %169 : vector<4x256xf32>
    %171 = vector.extract_strided_slice %170 {offsets = [0, 0], sizes = [4, 192], strides = [1, 1]} : vector<4x256xf32> to vector<4x192xf32>
    %172 = arith.negf %171 : vector<4x192xf32>
    %173 = math.exp %172 : vector<4x192xf32>
    %cst_66 = arith.constant 1.000000e+00 : f32
    %174 = vector.broadcast %cst_66 : f32 to vector<4x192xf32>
    %175 = arith.addf %174, %173 : vector<4x192xf32>
    %176 = arith.divf %174, %175 : vector<4x192xf32>
    %177 = vector.extract_strided_slice %170 {offsets = [0, 192], sizes = [4, 64], strides = [1, 1]} : vector<4x256xf32> to vector<4x64xf32>
    %178 = math.tanh %177 : vector<4x64xf32>
    %179 = vector.extract_strided_slice %176 {offsets = [0, 0], sizes = [4, 64], strides = [1, 1]} : vector<4x192xf32> to vector<4x64xf32>
    %180 = vector.extract_strided_slice %176 {offsets = [0, 64], sizes = [4, 64], strides = [1, 1]} : vector<4x192xf32> to vector<4x64xf32>
    %181 = vector.extract_strided_slice %176 {offsets = [0, 128], sizes = [4, 64], strides = [1, 1]} : vector<4x192xf32> to vector<4x64xf32>
    %182 = arith.mulf %180, %164 : vector<4x64xf32>
    %183 = arith.mulf %179, %178 : vector<4x64xf32>
    %184 = arith.addf %182, %183 : vector<4x64xf32>
    %185 = math.tanh %184 : vector<4x64xf32>
    %186 = arith.mulf %181, %185 : vector<4x64xf32>
    %187 = vector.extract_strided_slice %186 {offsets = [0, 0], sizes = [4, 32], strides = [1, 1]} : vector<4x64xf32> to vector<4x32xf32>
    %188 = vector.extract_strided_slice %186 {offsets = [0, 32], sizes = [4, 32], strides = [1, 1]} : vector<4x64xf32> to vector<4x32xf32>
    %cst_67 = arith.constant dense<0.000000e+00> : vector<4x256xf32>
    %189 = tpu.matmul %186, %1, %cst_67 {dimension_numbers = #tpu.dot_dimension_numbers<[1], [0], [0], [1], [0, 0, 1, 1], [], []>} : vector<4x64xf32>, vector<64x256xf32>, vector<4x256xf32> -> vector<4x256xf32>
    %190 = arith.addf %58, %189 : vector<4x256xf32>
    %191 = vector.extract_strided_slice %190 {offsets = [0, 0], sizes = [4, 192], strides = [1, 1]} : vector<4x256xf32> to vector<4x192xf32>
    %192 = arith.negf %191 : vector<4x192xf32>
    %193 = math.exp %192 : vector<4x192xf32>
    %cst_68 = arith.constant 1.000000e+00 : f32
    %194 = vector.broadcast %cst_68 : f32 to vector<4x192xf32>
    %195 = arith.addf %194, %193 : vector<4x192xf32>
    %196 = arith.divf %194, %195 : vector<4x192xf32>
    %197 = vector.extract_strided_slice %190 {offsets = [0, 192], sizes = [4, 64], strides = [1, 1]} : vector<4x256xf32> to vector<4x64xf32>
    %198 = math.tanh %197 : vector<4x64xf32>
    %199 = vector.extract_strided_slice %196 {offsets = [0, 0], sizes = [4, 64], strides = [1, 1]} : vector<4x192xf32> to vector<4x64xf32>
    %200 = vector.extract_strided_slice %196 {offsets = [0, 64], sizes = [4, 64], strides = [1, 1]} : vector<4x192xf32> to vector<4x64xf32>
    %201 = vector.extract_strided_slice %196 {offsets = [0, 128], sizes = [4, 64], strides = [1, 1]} : vector<4x192xf32> to vector<4x64xf32>
    %202 = arith.mulf %200, %184 : vector<4x64xf32>
    %203 = arith.mulf %199, %198 : vector<4x64xf32>
    %204 = arith.addf %202, %203 : vector<4x64xf32>
    %205 = math.tanh %204 : vector<4x64xf32>
    %206 = arith.mulf %201, %205 : vector<4x64xf32>
    %207 = vector.extract_strided_slice %206 {offsets = [0, 0], sizes = [4, 32], strides = [1, 1]} : vector<4x64xf32> to vector<4x32xf32>
    %208 = vector.extract_strided_slice %206 {offsets = [0, 32], sizes = [4, 32], strides = [1, 1]} : vector<4x64xf32> to vector<4x32xf32>
    %cst_69 = arith.constant dense<0.000000e+00> : vector<4x256xf32>
    %209 = tpu.matmul %206, %1, %cst_69 {dimension_numbers = #tpu.dot_dimension_numbers<[1], [0], [0], [1], [0, 0, 1, 1], [], []>} : vector<4x64xf32>, vector<64x256xf32>, vector<4x256xf32> -> vector<4x256xf32>
    %210 = arith.addf %66, %209 : vector<4x256xf32>
    %211 = vector.extract_strided_slice %210 {offsets = [0, 0], sizes = [4, 192], strides = [1, 1]} : vector<4x256xf32> to vector<4x192xf32>
    %212 = arith.negf %211 : vector<4x192xf32>
    %213 = math.exp %212 : vector<4x192xf32>
    %cst_70 = arith.constant 1.000000e+00 : f32
    %214 = vector.broadcast %cst_70 : f32 to vector<4x192xf32>
    %215 = arith.addf %214, %213 : vector<4x192xf32>
    %216 = arith.divf %214, %215 : vector<4x192xf32>
    %217 = vector.extract_strided_slice %210 {offsets = [0, 192], sizes = [4, 64], strides = [1, 1]} : vector<4x256xf32> to vector<4x64xf32>
    %218 = math.tanh %217 : vector<4x64xf32>
    %219 = vector.extract_strided_slice %216 {offsets = [0, 0], sizes = [4, 64], strides = [1, 1]} : vector<4x192xf32> to vector<4x64xf32>
    %220 = vector.extract_strided_slice %216 {offsets = [0, 64], sizes = [4, 64], strides = [1, 1]} : vector<4x192xf32> to vector<4x64xf32>
    %221 = vector.extract_strided_slice %216 {offsets = [0, 128], sizes = [4, 64], strides = [1, 1]} : vector<4x192xf32> to vector<4x64xf32>
    %222 = arith.mulf %220, %204 : vector<4x64xf32>
    %223 = arith.mulf %219, %218 : vector<4x64xf32>
    %224 = arith.addf %222, %223 : vector<4x64xf32>
    %225 = math.tanh %224 : vector<4x64xf32>
    %226 = arith.mulf %221, %225 : vector<4x64xf32>
    %227 = vector.extract_strided_slice %226 {offsets = [0, 0], sizes = [4, 32], strides = [1, 1]} : vector<4x64xf32> to vector<4x32xf32>
    %228 = vector.extract_strided_slice %226 {offsets = [0, 32], sizes = [4, 32], strides = [1, 1]} : vector<4x64xf32> to vector<4x32xf32>
    %229 = tpu.concatenate %87, %228 in 1 : vector<4x32xf32>, vector<4x32xf32> -> vector<4x64xf32>
    %230 = tpu.concatenate %107, %208 in 1 : vector<4x32xf32>, vector<4x32xf32> -> vector<4x64xf32>
    %231 = tpu.concatenate %127, %188 in 1 : vector<4x32xf32>, vector<4x32xf32> -> vector<4x64xf32>
    %232 = tpu.concatenate %147, %168 in 1 : vector<4x32xf32>, vector<4x32xf32> -> vector<4x64xf32>
    %233 = tpu.concatenate %167, %148 in 1 : vector<4x32xf32>, vector<4x32xf32> -> vector<4x64xf32>
    %234 = tpu.concatenate %187, %128 in 1 : vector<4x32xf32>, vector<4x32xf32> -> vector<4x64xf32>
    %235 = tpu.concatenate %207, %108 in 1 : vector<4x32xf32>, vector<4x32xf32> -> vector<4x64xf32>
    %236 = tpu.concatenate %227, %88 in 1 : vector<4x32xf32>, vector<4x32xf32> -> vector<4x64xf32>
    %cst_71 = arith.constant 0.000000e+00 : f32
    %237 = vector.broadcast %cst_71 : f32 to vector<4x64xf32>
    %238 = arith.cmpf ogt, %230, %229 : vector<4x64xf32>
    %239 = arith.extui %238 : vector<4x64xi1> to vector<4x64xi32>
    %240 = arith.sitofp %239 : vector<4x64xi32> to vector<4x64xf32>
    %241 = arith.addf %237, %240 : vector<4x64xf32>
    %242 = arith.cmpf ogt, %231, %229 : vector<4x64xf32>
    %243 = arith.extui %242 : vector<4x64xi1> to vector<4x64xi32>
    %244 = arith.sitofp %243 : vector<4x64xi32> to vector<4x64xf32>
    %245 = arith.addf %241, %244 : vector<4x64xf32>
    %246 = arith.cmpf ogt, %232, %229 : vector<4x64xf32>
    %247 = arith.extui %246 : vector<4x64xi1> to vector<4x64xi32>
    %248 = arith.sitofp %247 : vector<4x64xi32> to vector<4x64xf32>
    %249 = arith.addf %245, %248 : vector<4x64xf32>
    %250 = arith.cmpf ogt, %233, %229 : vector<4x64xf32>
    %251 = arith.extui %250 : vector<4x64xi1> to vector<4x64xi32>
    %252 = arith.sitofp %251 : vector<4x64xi32> to vector<4x64xf32>
    %253 = arith.addf %249, %252 : vector<4x64xf32>
    %254 = arith.cmpf ogt, %234, %229 : vector<4x64xf32>
    %255 = arith.extui %254 : vector<4x64xi1> to vector<4x64xi32>
    %256 = arith.sitofp %255 : vector<4x64xi32> to vector<4x64xf32>
    %257 = arith.addf %253, %256 : vector<4x64xf32>
    %258 = arith.cmpf ogt, %235, %229 : vector<4x64xf32>
    %259 = arith.extui %258 : vector<4x64xi1> to vector<4x64xi32>
    %260 = arith.sitofp %259 : vector<4x64xi32> to vector<4x64xf32>
    %261 = arith.addf %257, %260 : vector<4x64xf32>
    %262 = arith.cmpf ogt, %236, %229 : vector<4x64xf32>
    %263 = arith.extui %262 : vector<4x64xi1> to vector<4x64xi32>
    %264 = arith.sitofp %263 : vector<4x64xi32> to vector<4x64xf32>
    %265 = arith.addf %261, %264 : vector<4x64xf32>
    %cst_72 = arith.constant 0.000000e+00 : f32
    %266 = vector.broadcast %cst_72 : f32 to vector<4x64xf32>
    %267 = arith.cmpf oge, %229, %230 : vector<4x64xf32>
    %268 = arith.extui %267 : vector<4x64xi1> to vector<4x64xi32>
    %269 = arith.sitofp %268 : vector<4x64xi32> to vector<4x64xf32>
    %270 = arith.addf %266, %269 : vector<4x64xf32>
    %271 = arith.cmpf ogt, %231, %230 : vector<4x64xf32>
    %272 = arith.extui %271 : vector<4x64xi1> to vector<4x64xi32>
    %273 = arith.sitofp %272 : vector<4x64xi32> to vector<4x64xf32>
    %274 = arith.addf %270, %273 : vector<4x64xf32>
    %275 = arith.cmpf ogt, %232, %230 : vector<4x64xf32>
    %276 = arith.extui %275 : vector<4x64xi1> to vector<4x64xi32>
    %277 = arith.sitofp %276 : vector<4x64xi32> to vector<4x64xf32>
    %278 = arith.addf %274, %277 : vector<4x64xf32>
    %279 = arith.cmpf ogt, %233, %230 : vector<4x64xf32>
    %280 = arith.extui %279 : vector<4x64xi1> to vector<4x64xi32>
    %281 = arith.sitofp %280 : vector<4x64xi32> to vector<4x64xf32>
    %282 = arith.addf %278, %281 : vector<4x64xf32>
    %283 = arith.cmpf ogt, %234, %230 : vector<4x64xf32>
    %284 = arith.extui %283 : vector<4x64xi1> to vector<4x64xi32>
    %285 = arith.sitofp %284 : vector<4x64xi32> to vector<4x64xf32>
    %286 = arith.addf %282, %285 : vector<4x64xf32>
    %287 = arith.cmpf ogt, %235, %230 : vector<4x64xf32>
    %288 = arith.extui %287 : vector<4x64xi1> to vector<4x64xi32>
    %289 = arith.sitofp %288 : vector<4x64xi32> to vector<4x64xf32>
    %290 = arith.addf %286, %289 : vector<4x64xf32>
    %291 = arith.cmpf ogt, %236, %230 : vector<4x64xf32>
    %292 = arith.extui %291 : vector<4x64xi1> to vector<4x64xi32>
    %293 = arith.sitofp %292 : vector<4x64xi32> to vector<4x64xf32>
    %294 = arith.addf %290, %293 : vector<4x64xf32>
    %cst_73 = arith.constant 0.000000e+00 : f32
    %295 = vector.broadcast %cst_73 : f32 to vector<4x64xf32>
    %296 = arith.cmpf oge, %229, %231 : vector<4x64xf32>
    %297 = arith.extui %296 : vector<4x64xi1> to vector<4x64xi32>
    %298 = arith.sitofp %297 : vector<4x64xi32> to vector<4x64xf32>
    %299 = arith.addf %295, %298 : vector<4x64xf32>
    %300 = arith.cmpf oge, %230, %231 : vector<4x64xf32>
    %301 = arith.extui %300 : vector<4x64xi1> to vector<4x64xi32>
    %302 = arith.sitofp %301 : vector<4x64xi32> to vector<4x64xf32>
    %303 = arith.addf %299, %302 : vector<4x64xf32>
    %304 = arith.cmpf ogt, %232, %231 : vector<4x64xf32>
    %305 = arith.extui %304 : vector<4x64xi1> to vector<4x64xi32>
    %306 = arith.sitofp %305 : vector<4x64xi32> to vector<4x64xf32>
    %307 = arith.addf %303, %306 : vector<4x64xf32>
    %308 = arith.cmpf ogt, %233, %231 : vector<4x64xf32>
    %309 = arith.extui %308 : vector<4x64xi1> to vector<4x64xi32>
    %310 = arith.sitofp %309 : vector<4x64xi32> to vector<4x64xf32>
    %311 = arith.addf %307, %310 : vector<4x64xf32>
    %312 = arith.cmpf ogt, %234, %231 : vector<4x64xf32>
    %313 = arith.extui %312 : vector<4x64xi1> to vector<4x64xi32>
    %314 = arith.sitofp %313 : vector<4x64xi32> to vector<4x64xf32>
    %315 = arith.addf %311, %314 : vector<4x64xf32>
    %316 = arith.cmpf ogt, %235, %231 : vector<4x64xf32>
    %317 = arith.extui %316 : vector<4x64xi1> to vector<4x64xi32>
    %318 = arith.sitofp %317 : vector<4x64xi32> to vector<4x64xf32>
    %319 = arith.addf %315, %318 : vector<4x64xf32>
    %320 = arith.cmpf ogt, %236, %231 : vector<4x64xf32>
    %321 = arith.extui %320 : vector<4x64xi1> to vector<4x64xi32>
    %322 = arith.sitofp %321 : vector<4x64xi32> to vector<4x64xf32>
    %323 = arith.addf %319, %322 : vector<4x64xf32>
    %cst_74 = arith.constant 0.000000e+00 : f32
    %324 = vector.broadcast %cst_74 : f32 to vector<4x64xf32>
    %325 = arith.cmpf oge, %229, %232 : vector<4x64xf32>
    %326 = arith.extui %325 : vector<4x64xi1> to vector<4x64xi32>
    %327 = arith.sitofp %326 : vector<4x64xi32> to vector<4x64xf32>
    %328 = arith.addf %324, %327 : vector<4x64xf32>
    %329 = arith.cmpf oge, %230, %232 : vector<4x64xf32>
    %330 = arith.extui %329 : vector<4x64xi1> to vector<4x64xi32>
    %331 = arith.sitofp %330 : vector<4x64xi32> to vector<4x64xf32>
    %332 = arith.addf %328, %331 : vector<4x64xf32>
    %333 = arith.cmpf oge, %231, %232 : vector<4x64xf32>
    %334 = arith.extui %333 : vector<4x64xi1> to vector<4x64xi32>
    %335 = arith.sitofp %334 : vector<4x64xi32> to vector<4x64xf32>
    %336 = arith.addf %332, %335 : vector<4x64xf32>
    %337 = arith.cmpf ogt, %233, %232 : vector<4x64xf32>
    %338 = arith.extui %337 : vector<4x64xi1> to vector<4x64xi32>
    %339 = arith.sitofp %338 : vector<4x64xi32> to vector<4x64xf32>
    %340 = arith.addf %336, %339 : vector<4x64xf32>
    %341 = arith.cmpf ogt, %234, %232 : vector<4x64xf32>
    %342 = arith.extui %341 : vector<4x64xi1> to vector<4x64xi32>
    %343 = arith.sitofp %342 : vector<4x64xi32> to vector<4x64xf32>
    %344 = arith.addf %340, %343 : vector<4x64xf32>
    %345 = arith.cmpf ogt, %235, %232 : vector<4x64xf32>
    %346 = arith.extui %345 : vector<4x64xi1> to vector<4x64xi32>
    %347 = arith.sitofp %346 : vector<4x64xi32> to vector<4x64xf32>
    %348 = arith.addf %344, %347 : vector<4x64xf32>
    %349 = arith.cmpf ogt, %236, %232 : vector<4x64xf32>
    %350 = arith.extui %349 : vector<4x64xi1> to vector<4x64xi32>
    %351 = arith.sitofp %350 : vector<4x64xi32> to vector<4x64xf32>
    %352 = arith.addf %348, %351 : vector<4x64xf32>
    %cst_75 = arith.constant 0.000000e+00 : f32
    %353 = vector.broadcast %cst_75 : f32 to vector<4x64xf32>
    %354 = arith.cmpf oge, %229, %233 : vector<4x64xf32>
    %355 = arith.extui %354 : vector<4x64xi1> to vector<4x64xi32>
    %356 = arith.sitofp %355 : vector<4x64xi32> to vector<4x64xf32>
    %357 = arith.addf %353, %356 : vector<4x64xf32>
    %358 = arith.cmpf oge, %230, %233 : vector<4x64xf32>
    %359 = arith.extui %358 : vector<4x64xi1> to vector<4x64xi32>
    %360 = arith.sitofp %359 : vector<4x64xi32> to vector<4x64xf32>
    %361 = arith.addf %357, %360 : vector<4x64xf32>
    %362 = arith.cmpf oge, %231, %233 : vector<4x64xf32>
    %363 = arith.extui %362 : vector<4x64xi1> to vector<4x64xi32>
    %364 = arith.sitofp %363 : vector<4x64xi32> to vector<4x64xf32>
    %365 = arith.addf %361, %364 : vector<4x64xf32>
    %366 = arith.cmpf oge, %232, %233 : vector<4x64xf32>
    %367 = arith.extui %366 : vector<4x64xi1> to vector<4x64xi32>
    %368 = arith.sitofp %367 : vector<4x64xi32> to vector<4x64xf32>
    %369 = arith.addf %365, %368 : vector<4x64xf32>
    %370 = arith.cmpf ogt, %234, %233 : vector<4x64xf32>
    %371 = arith.extui %370 : vector<4x64xi1> to vector<4x64xi32>
    %372 = arith.sitofp %371 : vector<4x64xi32> to vector<4x64xf32>
    %373 = arith.addf %369, %372 : vector<4x64xf32>
    %374 = arith.cmpf ogt, %235, %233 : vector<4x64xf32>
    %375 = arith.extui %374 : vector<4x64xi1> to vector<4x64xi32>
    %376 = arith.sitofp %375 : vector<4x64xi32> to vector<4x64xf32>
    %377 = arith.addf %373, %376 : vector<4x64xf32>
    %378 = arith.cmpf ogt, %236, %233 : vector<4x64xf32>
    %379 = arith.extui %378 : vector<4x64xi1> to vector<4x64xi32>
    %380 = arith.sitofp %379 : vector<4x64xi32> to vector<4x64xf32>
    %381 = arith.addf %377, %380 : vector<4x64xf32>
    %cst_76 = arith.constant 0.000000e+00 : f32
    %382 = vector.broadcast %cst_76 : f32 to vector<4x64xf32>
    %383 = arith.cmpf oge, %229, %234 : vector<4x64xf32>
    %384 = arith.extui %383 : vector<4x64xi1> to vector<4x64xi32>
    %385 = arith.sitofp %384 : vector<4x64xi32> to vector<4x64xf32>
    %386 = arith.addf %382, %385 : vector<4x64xf32>
    %387 = arith.cmpf oge, %230, %234 : vector<4x64xf32>
    %388 = arith.extui %387 : vector<4x64xi1> to vector<4x64xi32>
    %389 = arith.sitofp %388 : vector<4x64xi32> to vector<4x64xf32>
    %390 = arith.addf %386, %389 : vector<4x64xf32>
    %391 = arith.cmpf oge, %231, %234 : vector<4x64xf32>
    %392 = arith.extui %391 : vector<4x64xi1> to vector<4x64xi32>
    %393 = arith.sitofp %392 : vector<4x64xi32> to vector<4x64xf32>
    %394 = arith.addf %390, %393 : vector<4x64xf32>
    %395 = arith.cmpf oge, %232, %234 : vector<4x64xf32>
    %396 = arith.extui %395 : vector<4x64xi1> to vector<4x64xi32>
    %397 = arith.sitofp %396 : vector<4x64xi32> to vector<4x64xf32>
    %398 = arith.addf %394, %397 : vector<4x64xf32>
    %399 = arith.cmpf oge, %233, %234 : vector<4x64xf32>
    %400 = arith.extui %399 : vector<4x64xi1> to vector<4x64xi32>
    %401 = arith.sitofp %400 : vector<4x64xi32> to vector<4x64xf32>
    %402 = arith.addf %398, %401 : vector<4x64xf32>
    %403 = arith.cmpf ogt, %235, %234 : vector<4x64xf32>
    %404 = arith.extui %403 : vector<4x64xi1> to vector<4x64xi32>
    %405 = arith.sitofp %404 : vector<4x64xi32> to vector<4x64xf32>
    %406 = arith.addf %402, %405 : vector<4x64xf32>
    %407 = arith.cmpf ogt, %236, %234 : vector<4x64xf32>
    %408 = arith.extui %407 : vector<4x64xi1> to vector<4x64xi32>
    %409 = arith.sitofp %408 : vector<4x64xi32> to vector<4x64xf32>
    %410 = arith.addf %406, %409 : vector<4x64xf32>
    %cst_77 = arith.constant 0.000000e+00 : f32
    %411 = vector.broadcast %cst_77 : f32 to vector<4x64xf32>
    %412 = arith.cmpf oge, %229, %235 : vector<4x64xf32>
    %413 = arith.extui %412 : vector<4x64xi1> to vector<4x64xi32>
    %414 = arith.sitofp %413 : vector<4x64xi32> to vector<4x64xf32>
    %415 = arith.addf %411, %414 : vector<4x64xf32>
    %416 = arith.cmpf oge, %230, %235 : vector<4x64xf32>
    %417 = arith.extui %416 : vector<4x64xi1> to vector<4x64xi32>
    %418 = arith.sitofp %417 : vector<4x64xi32> to vector<4x64xf32>
    %419 = arith.addf %415, %418 : vector<4x64xf32>
    %420 = arith.cmpf oge, %231, %235 : vector<4x64xf32>
    %421 = arith.extui %420 : vector<4x64xi1> to vector<4x64xi32>
    %422 = arith.sitofp %421 : vector<4x64xi32> to vector<4x64xf32>
    %423 = arith.addf %419, %422 : vector<4x64xf32>
    %424 = arith.cmpf oge, %232, %235 : vector<4x64xf32>
    %425 = arith.extui %424 : vector<4x64xi1> to vector<4x64xi32>
    %426 = arith.sitofp %425 : vector<4x64xi32> to vector<4x64xf32>
    %427 = arith.addf %423, %426 : vector<4x64xf32>
    %428 = arith.cmpf oge, %233, %235 : vector<4x64xf32>
    %429 = arith.extui %428 : vector<4x64xi1> to vector<4x64xi32>
    %430 = arith.sitofp %429 : vector<4x64xi32> to vector<4x64xf32>
    %431 = arith.addf %427, %430 : vector<4x64xf32>
    %432 = arith.cmpf oge, %234, %235 : vector<4x64xf32>
    %433 = arith.extui %432 : vector<4x64xi1> to vector<4x64xi32>
    %434 = arith.sitofp %433 : vector<4x64xi32> to vector<4x64xf32>
    %435 = arith.addf %431, %434 : vector<4x64xf32>
    %436 = arith.cmpf ogt, %236, %235 : vector<4x64xf32>
    %437 = arith.extui %436 : vector<4x64xi1> to vector<4x64xi32>
    %438 = arith.sitofp %437 : vector<4x64xi32> to vector<4x64xf32>
    %439 = arith.addf %435, %438 : vector<4x64xf32>
    %cst_78 = arith.constant 0.000000e+00 : f32
    %440 = vector.broadcast %cst_78 : f32 to vector<4x64xf32>
    %441 = arith.cmpf oge, %229, %236 : vector<4x64xf32>
    %442 = arith.extui %441 : vector<4x64xi1> to vector<4x64xi32>
    %443 = arith.sitofp %442 : vector<4x64xi32> to vector<4x64xf32>
    %444 = arith.addf %440, %443 : vector<4x64xf32>
    %445 = arith.cmpf oge, %230, %236 : vector<4x64xf32>
    %446 = arith.extui %445 : vector<4x64xi1> to vector<4x64xi32>
    %447 = arith.sitofp %446 : vector<4x64xi32> to vector<4x64xf32>
    %448 = arith.addf %444, %447 : vector<4x64xf32>
    %449 = arith.cmpf oge, %231, %236 : vector<4x64xf32>
    %450 = arith.extui %449 : vector<4x64xi1> to vector<4x64xi32>
    %451 = arith.sitofp %450 : vector<4x64xi32> to vector<4x64xf32>
    %452 = arith.addf %448, %451 : vector<4x64xf32>
    %453 = arith.cmpf oge, %232, %236 : vector<4x64xf32>
    %454 = arith.extui %453 : vector<4x64xi1> to vector<4x64xi32>
    %455 = arith.sitofp %454 : vector<4x64xi32> to vector<4x64xf32>
    %456 = arith.addf %452, %455 : vector<4x64xf32>
    %457 = arith.cmpf oge, %233, %236 : vector<4x64xf32>
    %458 = arith.extui %457 : vector<4x64xi1> to vector<4x64xi32>
    %459 = arith.sitofp %458 : vector<4x64xi32> to vector<4x64xf32>
    %460 = arith.addf %456, %459 : vector<4x64xf32>
    %461 = arith.cmpf oge, %234, %236 : vector<4x64xf32>
    %462 = arith.extui %461 : vector<4x64xi1> to vector<4x64xi32>
    %463 = arith.sitofp %462 : vector<4x64xi32> to vector<4x64xf32>
    %464 = arith.addf %460, %463 : vector<4x64xf32>
    %465 = arith.cmpf oge, %235, %236 : vector<4x64xf32>
    %466 = arith.extui %465 : vector<4x64xi1> to vector<4x64xi32>
    %467 = arith.sitofp %466 : vector<4x64xi32> to vector<4x64xf32>
    %468 = arith.addf %464, %467 : vector<4x64xf32>
    %cst_79 = arith.constant 2.000000e+00 : f32
    %469 = vector.broadcast %cst_79 : f32 to vector<4x64xf32>
    %470 = arith.cmpf olt, %265, %469 : vector<4x64xf32>
    %cst_80 = arith.constant 2.000000e+00 : f32
    %471 = vector.broadcast %cst_80 : f32 to vector<4x64xf32>
    %472 = arith.cmpf olt, %294, %471 : vector<4x64xf32>
    %cst_81 = arith.constant 2.000000e+00 : f32
    %473 = vector.broadcast %cst_81 : f32 to vector<4x64xf32>
    %474 = arith.cmpf olt, %323, %473 : vector<4x64xf32>
    %cst_82 = arith.constant 2.000000e+00 : f32
    %475 = vector.broadcast %cst_82 : f32 to vector<4x64xf32>
    %476 = arith.cmpf olt, %352, %475 : vector<4x64xf32>
    %cst_83 = arith.constant 2.000000e+00 : f32
    %477 = vector.broadcast %cst_83 : f32 to vector<4x64xf32>
    %478 = arith.cmpf olt, %381, %477 : vector<4x64xf32>
    %cst_84 = arith.constant 2.000000e+00 : f32
    %479 = vector.broadcast %cst_84 : f32 to vector<4x64xf32>
    %480 = arith.cmpf olt, %410, %479 : vector<4x64xf32>
    %cst_85 = arith.constant 2.000000e+00 : f32
    %481 = vector.broadcast %cst_85 : f32 to vector<4x64xf32>
    %482 = arith.cmpf olt, %439, %481 : vector<4x64xf32>
    %cst_86 = arith.constant 2.000000e+00 : f32
    %483 = vector.broadcast %cst_86 : f32 to vector<4x64xf32>
    %484 = arith.cmpf olt, %468, %483 : vector<4x64xf32>
    %cst_87 = arith.constant 0.000000e+00 : f32
    %485 = vector.broadcast %cst_87 : f32 to vector<4x64xf32>
    %cst_88 = arith.constant 0.000000e+00 : f32
    %486 = vector.broadcast %cst_88 : f32 to vector<4x64xf32>
    %cst_89 = arith.constant 0.000000e+00 : f32
    %487 = vector.broadcast %cst_89 : f32 to vector<4x64xf32>
    %488 = arith.cmpf oeq, %486, %487 : vector<4x64xf32>
    %489 = arith.andi %470, %488 : vector<4x64xi1>
    %cst_90 = arith.constant 0.000000e+00 : f32
    %490 = vector.broadcast %cst_90 : f32 to vector<4x64xf32>
    %491 = arith.select %489, %229, %490 : vector<4x64xi1>, vector<4x64xf32>
    %492 = arith.addf %485, %491 : vector<4x64xf32>
    %493 = arith.extui %470 : vector<4x64xi1> to vector<4x64xi32>
    %494 = arith.sitofp %493 : vector<4x64xi32> to vector<4x64xf32>
    %495 = arith.addf %486, %494 : vector<4x64xf32>
    %cst_91 = arith.constant 0.000000e+00 : f32
    %496 = vector.broadcast %cst_91 : f32 to vector<4x64xf32>
    %497 = arith.cmpf oeq, %495, %496 : vector<4x64xf32>
    %498 = arith.andi %472, %497 : vector<4x64xi1>
    %cst_92 = arith.constant 0.000000e+00 : f32
    %499 = vector.broadcast %cst_92 : f32 to vector<4x64xf32>
    %500 = arith.select %498, %230, %499 : vector<4x64xi1>, vector<4x64xf32>
    %501 = arith.addf %492, %500 : vector<4x64xf32>
    %502 = arith.extui %472 : vector<4x64xi1> to vector<4x64xi32>
    %503 = arith.sitofp %502 : vector<4x64xi32> to vector<4x64xf32>
    %504 = arith.addf %495, %503 : vector<4x64xf32>
    %cst_93 = arith.constant 0.000000e+00 : f32
    %505 = vector.broadcast %cst_93 : f32 to vector<4x64xf32>
    %506 = arith.cmpf oeq, %504, %505 : vector<4x64xf32>
    %507 = arith.andi %474, %506 : vector<4x64xi1>
    %cst_94 = arith.constant 0.000000e+00 : f32
    %508 = vector.broadcast %cst_94 : f32 to vector<4x64xf32>
    %509 = arith.select %507, %231, %508 : vector<4x64xi1>, vector<4x64xf32>
    %510 = arith.addf %501, %509 : vector<4x64xf32>
    %511 = arith.extui %474 : vector<4x64xi1> to vector<4x64xi32>
    %512 = arith.sitofp %511 : vector<4x64xi32> to vector<4x64xf32>
    %513 = arith.addf %504, %512 : vector<4x64xf32>
    %cst_95 = arith.constant 0.000000e+00 : f32
    %514 = vector.broadcast %cst_95 : f32 to vector<4x64xf32>
    %515 = arith.cmpf oeq, %513, %514 : vector<4x64xf32>
    %516 = arith.andi %476, %515 : vector<4x64xi1>
    %cst_96 = arith.constant 0.000000e+00 : f32
    %517 = vector.broadcast %cst_96 : f32 to vector<4x64xf32>
    %518 = arith.select %516, %232, %517 : vector<4x64xi1>, vector<4x64xf32>
    %519 = arith.addf %510, %518 : vector<4x64xf32>
    %520 = arith.extui %476 : vector<4x64xi1> to vector<4x64xi32>
    %521 = arith.sitofp %520 : vector<4x64xi32> to vector<4x64xf32>
    %522 = arith.addf %513, %521 : vector<4x64xf32>
    %cst_97 = arith.constant 0.000000e+00 : f32
    %523 = vector.broadcast %cst_97 : f32 to vector<4x64xf32>
    %524 = arith.cmpf oeq, %522, %523 : vector<4x64xf32>
    %525 = arith.andi %478, %524 : vector<4x64xi1>
    %cst_98 = arith.constant 0.000000e+00 : f32
    %526 = vector.broadcast %cst_98 : f32 to vector<4x64xf32>
    %527 = arith.select %525, %233, %526 : vector<4x64xi1>, vector<4x64xf32>
    %528 = arith.addf %519, %527 : vector<4x64xf32>
    %529 = arith.extui %478 : vector<4x64xi1> to vector<4x64xi32>
    %530 = arith.sitofp %529 : vector<4x64xi32> to vector<4x64xf32>
    %531 = arith.addf %522, %530 : vector<4x64xf32>
    %cst_99 = arith.constant 0.000000e+00 : f32
    %532 = vector.broadcast %cst_99 : f32 to vector<4x64xf32>
    %533 = arith.cmpf oeq, %531, %532 : vector<4x64xf32>
    %534 = arith.andi %480, %533 : vector<4x64xi1>
    %cst_100 = arith.constant 0.000000e+00 : f32
    %535 = vector.broadcast %cst_100 : f32 to vector<4x64xf32>
    %536 = arith.select %534, %234, %535 : vector<4x64xi1>, vector<4x64xf32>
    %537 = arith.addf %528, %536 : vector<4x64xf32>
    %538 = arith.extui %480 : vector<4x64xi1> to vector<4x64xi32>
    %539 = arith.sitofp %538 : vector<4x64xi32> to vector<4x64xf32>
    %540 = arith.addf %531, %539 : vector<4x64xf32>
    %cst_101 = arith.constant 0.000000e+00 : f32
    %541 = vector.broadcast %cst_101 : f32 to vector<4x64xf32>
    %542 = arith.cmpf oeq, %540, %541 : vector<4x64xf32>
    %543 = arith.andi %482, %542 : vector<4x64xi1>
    %cst_102 = arith.constant 0.000000e+00 : f32
    %544 = vector.broadcast %cst_102 : f32 to vector<4x64xf32>
    %545 = arith.select %543, %235, %544 : vector<4x64xi1>, vector<4x64xf32>
    %546 = arith.addf %537, %545 : vector<4x64xf32>
    %547 = arith.extui %482 : vector<4x64xi1> to vector<4x64xi32>
    %548 = arith.sitofp %547 : vector<4x64xi32> to vector<4x64xf32>
    %549 = arith.addf %540, %548 : vector<4x64xf32>
    %cst_103 = arith.constant 0.000000e+00 : f32
    %550 = vector.broadcast %cst_103 : f32 to vector<4x64xf32>
    %551 = arith.cmpf oeq, %549, %550 : vector<4x64xf32>
    %552 = arith.andi %484, %551 : vector<4x64xi1>
    %cst_104 = arith.constant 0.000000e+00 : f32
    %553 = vector.broadcast %cst_104 : f32 to vector<4x64xf32>
    %554 = arith.select %552, %236, %553 : vector<4x64xi1>, vector<4x64xf32>
    %555 = arith.addf %546, %554 : vector<4x64xf32>
    %cst_105 = arith.constant 0.000000e+00 : f32
    %556 = vector.broadcast %cst_105 : f32 to vector<4x64xf32>
    %cst_106 = arith.constant 0.000000e+00 : f32
    %557 = vector.broadcast %cst_106 : f32 to vector<4x64xf32>
    %cst_107 = arith.constant 1.000000e+00 : f32
    %558 = vector.broadcast %cst_107 : f32 to vector<4x64xf32>
    %559 = arith.cmpf oeq, %557, %558 : vector<4x64xf32>
    %560 = arith.andi %470, %559 : vector<4x64xi1>
    %cst_108 = arith.constant 0.000000e+00 : f32
    %561 = vector.broadcast %cst_108 : f32 to vector<4x64xf32>
    %562 = arith.select %560, %229, %561 : vector<4x64xi1>, vector<4x64xf32>
    %563 = arith.addf %556, %562 : vector<4x64xf32>
    %564 = arith.extui %470 : vector<4x64xi1> to vector<4x64xi32>
    %565 = arith.sitofp %564 : vector<4x64xi32> to vector<4x64xf32>
    %566 = arith.addf %557, %565 : vector<4x64xf32>
    %cst_109 = arith.constant 1.000000e+00 : f32
    %567 = vector.broadcast %cst_109 : f32 to vector<4x64xf32>
    %568 = arith.cmpf oeq, %566, %567 : vector<4x64xf32>
    %569 = arith.andi %472, %568 : vector<4x64xi1>
    %cst_110 = arith.constant 0.000000e+00 : f32
    %570 = vector.broadcast %cst_110 : f32 to vector<4x64xf32>
    %571 = arith.select %569, %230, %570 : vector<4x64xi1>, vector<4x64xf32>
    %572 = arith.addf %563, %571 : vector<4x64xf32>
    %573 = arith.extui %472 : vector<4x64xi1> to vector<4x64xi32>
    %574 = arith.sitofp %573 : vector<4x64xi32> to vector<4x64xf32>
    %575 = arith.addf %566, %574 : vector<4x64xf32>
    %cst_111 = arith.constant 1.000000e+00 : f32
    %576 = vector.broadcast %cst_111 : f32 to vector<4x64xf32>
    %577 = arith.cmpf oeq, %575, %576 : vector<4x64xf32>
    %578 = arith.andi %474, %577 : vector<4x64xi1>
    %cst_112 = arith.constant 0.000000e+00 : f32
    %579 = vector.broadcast %cst_112 : f32 to vector<4x64xf32>
    %580 = arith.select %578, %231, %579 : vector<4x64xi1>, vector<4x64xf32>
    %581 = arith.addf %572, %580 : vector<4x64xf32>
    %582 = arith.extui %474 : vector<4x64xi1> to vector<4x64xi32>
    %583 = arith.sitofp %582 : vector<4x64xi32> to vector<4x64xf32>
    %584 = arith.addf %575, %583 : vector<4x64xf32>
    %cst_113 = arith.constant 1.000000e+00 : f32
    %585 = vector.broadcast %cst_113 : f32 to vector<4x64xf32>
    %586 = arith.cmpf oeq, %584, %585 : vector<4x64xf32>
    %587 = arith.andi %476, %586 : vector<4x64xi1>
    %cst_114 = arith.constant 0.000000e+00 : f32
    %588 = vector.broadcast %cst_114 : f32 to vector<4x64xf32>
    %589 = arith.select %587, %232, %588 : vector<4x64xi1>, vector<4x64xf32>
    %590 = arith.addf %581, %589 : vector<4x64xf32>
    %591 = arith.extui %476 : vector<4x64xi1> to vector<4x64xi32>
    %592 = arith.sitofp %591 : vector<4x64xi32> to vector<4x64xf32>
    %593 = arith.addf %584, %592 : vector<4x64xf32>
    %cst_115 = arith.constant 1.000000e+00 : f32
    %594 = vector.broadcast %cst_115 : f32 to vector<4x64xf32>
    %595 = arith.cmpf oeq, %593, %594 : vector<4x64xf32>
    %596 = arith.andi %478, %595 : vector<4x64xi1>
    %cst_116 = arith.constant 0.000000e+00 : f32
    %597 = vector.broadcast %cst_116 : f32 to vector<4x64xf32>
    %598 = arith.select %596, %233, %597 : vector<4x64xi1>, vector<4x64xf32>
    %599 = arith.addf %590, %598 : vector<4x64xf32>
    %600 = arith.extui %478 : vector<4x64xi1> to vector<4x64xi32>
    %601 = arith.sitofp %600 : vector<4x64xi32> to vector<4x64xf32>
    %602 = arith.addf %593, %601 : vector<4x64xf32>
    %cst_117 = arith.constant 1.000000e+00 : f32
    %603 = vector.broadcast %cst_117 : f32 to vector<4x64xf32>
    %604 = arith.cmpf oeq, %602, %603 : vector<4x64xf32>
    %605 = arith.andi %480, %604 : vector<4x64xi1>
    %cst_118 = arith.constant 0.000000e+00 : f32
    %606 = vector.broadcast %cst_118 : f32 to vector<4x64xf32>
    %607 = arith.select %605, %234, %606 : vector<4x64xi1>, vector<4x64xf32>
    %608 = arith.addf %599, %607 : vector<4x64xf32>
    %609 = arith.extui %480 : vector<4x64xi1> to vector<4x64xi32>
    %610 = arith.sitofp %609 : vector<4x64xi32> to vector<4x64xf32>
    %611 = arith.addf %602, %610 : vector<4x64xf32>
    %cst_119 = arith.constant 1.000000e+00 : f32
    %612 = vector.broadcast %cst_119 : f32 to vector<4x64xf32>
    %613 = arith.cmpf oeq, %611, %612 : vector<4x64xf32>
    %614 = arith.andi %482, %613 : vector<4x64xi1>
    %cst_120 = arith.constant 0.000000e+00 : f32
    %615 = vector.broadcast %cst_120 : f32 to vector<4x64xf32>
    %616 = arith.select %614, %235, %615 : vector<4x64xi1>, vector<4x64xf32>
    %617 = arith.addf %608, %616 : vector<4x64xf32>
    %618 = arith.extui %482 : vector<4x64xi1> to vector<4x64xi32>
    %619 = arith.sitofp %618 : vector<4x64xi32> to vector<4x64xf32>
    %620 = arith.addf %611, %619 : vector<4x64xf32>
    %cst_121 = arith.constant 1.000000e+00 : f32
    %621 = vector.broadcast %cst_121 : f32 to vector<4x64xf32>
    %622 = arith.cmpf oeq, %620, %621 : vector<4x64xf32>
    %623 = arith.andi %484, %622 : vector<4x64xi1>
    %cst_122 = arith.constant 0.000000e+00 : f32
    %624 = vector.broadcast %cst_122 : f32 to vector<4x64xf32>
    %625 = arith.select %623, %236, %624 : vector<4x64xi1>, vector<4x64xf32>
    %626 = arith.addf %617, %625 : vector<4x64xf32>
    %627 = vector.extract_strided_slice %555 {offsets = [0, 0], sizes = [2, 64], strides = [1, 1]} : vector<4x64xf32> to vector<2x64xf32>
    %628 = vector.extract_strided_slice %626 {offsets = [0, 0], sizes = [2, 64], strides = [1, 1]} : vector<4x64xf32> to vector<2x64xf32>
    %629 = vector.extract_strided_slice %555 {offsets = [2, 0], sizes = [2, 64], strides = [1, 1]} : vector<4x64xf32> to vector<2x64xf32>
    %630 = vector.extract_strided_slice %626 {offsets = [2, 0], sizes = [2, 64], strides = [1, 1]} : vector<4x64xf32> to vector<2x64xf32>
    %631 = tpu.concatenate %627, %628, %629, %630 in 1 : vector<2x64xf32>, vector<2x64xf32>, vector<2x64xf32>, vector<2x64xf32> -> vector<2x256xf32>
    %c0_123 = arith.constant 0 : index
    %c0_124 = arith.constant 0 : index
    %632 = vector.load %arg4[%c0_123, %c0_124] : memref<256x64xf32, #tpu.memory_space<vmem>>, vector<256x64xf32>
    %cst_125 = arith.constant dense<0.000000e+00> : vector<2x64xf32>
    %633 = tpu.matmul %631, %632, %cst_125 {dimension_numbers = #tpu.dot_dimension_numbers<[1], [0], [0], [1], [0, 0, 1, 1], [], []>} : vector<2x256xf32>, vector<256x64xf32>, vector<2x64xf32> -> vector<2x64xf32>
    %c0_126 = arith.constant 0 : index
    %c0_127 = arith.constant 0 : index
    %634 = vector.load %arg5[%c0_126, %c0_127] : memref<1x64xf32, #tpu.memory_space<vmem>>, vector<1x64xf32>
    %635 = vector.broadcast %634 : vector<1x64xf32> to vector<2x64xf32>
    %636 = arith.addf %633, %635 : vector<2x64xf32>
    %cst_128 = arith.constant 0.000000e+00 : f32
    %637 = vector.broadcast %cst_128 : f32 to vector<2x64xf32>
    %638 = arith.maximumf %636, %637 : vector<2x64xf32>
    %c0_129 = arith.constant 0 : index
    %c0_130 = arith.constant 0 : index
    %639 = vector.load %arg6[%c0_129, %c0_130] : memref<64x4xf32, #tpu.memory_space<vmem>>, vector<64x4xf32>
    %cst_131 = arith.constant dense<0.000000e+00> : vector<2x4xf32>
    %640 = tpu.matmul %638, %639, %cst_131 {dimension_numbers = #tpu.dot_dimension_numbers<[1], [0], [0], [1], [0, 0, 1, 1], [], []>} : vector<2x64xf32>, vector<64x4xf32>, vector<2x4xf32> -> vector<2x4xf32>
    %c0_132 = arith.constant 0 : index
    %c0_133 = arith.constant 0 : index
    %641 = vector.load %arg7[%c0_132, %c0_133] : memref<1x4xf32, #tpu.memory_space<vmem>>, vector<1x4xf32>
    %642 = vector.broadcast %641 : vector<1x4xf32> to vector<2x4xf32>
    %643 = arith.addf %640, %642 : vector<2x4xf32>
    %c0_134 = arith.constant 0 : index
    %c0_135 = arith.constant 0 : index
    %644 = vector.load %arg8[%c0_134, %c0_135] : memref<2x4xf32, #tpu.memory_space<vmem>>, vector<2x4xf32>
    tpu.vector_store %arg8[%c0_134, %c0_135], %643 {strides = array<i32>} : memref<2x4xf32, #tpu.memory_space<vmem>>, vector<2x4xf32>,
    return
  }
}

</mosaic_0001>

<bundles_post_ra>
// kernel: lstm_text_forward.1
= control target key start
LH: loop header
LB: loop body
LE: loop exit
PB: predicated region body
PF: predicated region fallthrough
CT: control target
= control target key end

     0   :  { %s2753_s11 = smov 32   ;;  %v2754_v14 = vmov 0.0   ;;  %s3740_s0 = inlined_call_operand.vmem [shape: f32[8,4,32], index: 0, kind: input, shape index: {}]   ;;  %s3741_s1 = inlined_call_operand.vmem [shape: f32[64,256], index: 1, kind: input, shape index: {}]   ;;  %s3742_s2 = inlined_call_operand.vmem [shape: f32[64,256], index: 2, kind: input, shape index: {}]   ;;  %s3743_s3 = inlined_call_operand.vmem [shape: f32[1,256], index: 3, kind: input, shape index: {}]   ;;  %s3744_s4 = inlined_call_operand.vmem [shape: f32[256,64], index: 4, kind: input, shape index: {}]   ;;  %s3745_s5 = inlined_call_operand.vmem [shape: f32[1,64], index: 5, kind: input, shape index: {}]   ;;  %s3746_s6 = inlined_call_operand.vmem [shape: f32[64,4], index: 6, kind: input, shape index: {}]   ;;  %s3747_s7 = inlined_call_operand.vmem [shape: f32[1,4], index: 7, kind: input, shape index: {}]   ;;  %s3748_s8 = inlined_call_operand.hbm [shape: f32[2,4], index: 8, kind: output, shape index: {}]  }
   0x1   :  { %v2807_v0 = vld [vmem:[%s3740_s0 + $0x1c] sm:$0xf]  ;;  %v2812_v1 = vld [vmem:[%s3740_s0 + $0x14] sm:$0xf]  ;;  %v31_v2 = vld [vmem:[%s3741_s1 + $0x8] sm:$0xff]  ;;  %151 = vmatprep.mubr.f32.mxu0 %v2754_v14  ;;  %234 = vmatprep.mubr.f32.mxu1 %v2754_v14 }
   0x2   :  { %67 = vrot.lane.b32.xlu0 %v2807_v0, %s2753_s11  ;;  %v2822_v3 = vld [vmem:[%s3740_s0 + $0xc] sm:$0xf]  ;;  %v2827_v4 = vld [vmem:[%s3740_s0 + $0x4] sm:$0xf]  ;;  %v33_v5 = vld [vmem:[%s3741_s1 + $0x18] sm:$0xff] }
   0x3   :  { %408 = vrot.lane.b32.xlu1 %v2822_v3, %s2753_s11  ;;  %v2834_v6 = vpack.c.bf16 %v33_v5, %v31_v2  ;;  %v30_v7 = vld [vmem:[%s3741_s1] sm:$0xff]  ;;  %v32_v8 = vld [vmem:[%s3741_s1 + $0x10] sm:$0xff]  ;;  %v35_v9 = vld [vmem:[%s3741_s1 + $0x28] sm:$0xff] }
   0x4   :  { %v2845_v10 = vpack.c.bf16 %v32_v8, %v30_v7  ;;  %v37_v11 = vld [vmem:[%s3741_s1 + $0x38] sm:$0xff]  ;;  %v34_v12 = vld [vmem:[%s3741_s1 + $0x20] sm:$0xff]  ;;  %v36_v13 = vld [vmem:[%s3741_s1 + $0x30] sm:$0xff] }
   0x5   :  { %2291 = vmatprep.subr.bf16.mxu0 %v2834_v6  ;;  %v2859_v15 = vpack.c.bf16 %v37_v11, %v35_v9  ;;  %v39_v16 = vld [vmem:[%s3741_s1 + $0x48] sm:$0xff]  ;;  %v41_v17 = vld [vmem:[%s3741_s1 + $0x58] sm:$0xff]  ;;  %2307 = vmatprep.subr.bf16.mxu1 %v2834_v6  ;;  %v2871_v18 = vpack.c.bf16 %v36_v13, %v34_v12  ;;  %v38_v20 = vld [vmem:[%s3741_s1 + $0x40] sm:$0xff] }
   0x6   :  { %246 = vrot.lane.b32.xlu0 %v2812_v1, %s2753_s11  ;;  %2293 = vmatpush1.bf16.msra.mxu0 %v2845_v10  ;;  %v2876_v19 = vpack.c.bf16 %v41_v17, %v39_v16  ;;  %v40_v21 = vld [vmem:[%s3741_s1 + $0x50] sm:$0xff]  ;;  %v43_v22 = vld [vmem:[%s3741_s1 + $0x68] sm:$0xff]  ;;  %v45_v23 = vld [vmem:[%s3741_s1 + $0x78] sm:$0xff] }
   0x7   :  { %566 = vrot.lane.b32.xlu1 %v2827_v4, %s2753_s11  ;;  %2295 = vmatprep.subr.bf16.mxu0 %v2859_v15 }
   0x8   :  { %2309 = vmatpush1.bf16.msra.mxu1 %v2845_v10 }
   0x9   :  { %13 = vsyncpa [#allocation3], 0  ;;  %2311 = vmatprep.subr.bf16.mxu1 %v2859_v15  ;;  %v2893_v24 = vpack.c.bf16 %v40_v21, %v38_v20  ;;  %v2896_v25 = vpack.c.bf16 %v45_v23, %v43_v22  ;;  %v42_v26 = vld [vmem:[%s3741_s1 + $0x60] sm:$0xff]  ;;  %v44_v27 = vld [vmem:[%s3741_s1 + $0x70] sm:$0xff]  ;;  %vm70_vm0 = vcmask 261120   ;;  %vm83_vm1 = vcmask 523264  }
   0xa   :  { %2297 = vmatpush1.bf16.msra.mxu0 %v2871_v18  ;;  %v2907_v28 = vpack.c.bf16 %v44_v27, %v42_v26  ;;  %v2919_v29 = vld [vmem:[%s3740_s0] sm:$0xf]  ;;  %v2934_v32 = vld [vmem:[%s3740_s0 + $0x8] sm:$0xf]  ;;  %v2951_v35 = vld [vmem:[%s3740_s0 + $0x10] sm:$0xf]  ;;  %v73_v5 = vlaneseq }
   0xb   :  { %2299 = vmatprep.subr.bf16.mxu0 %v2876_v19  ;;  %v47_v38 = vld [vmem:[%s3742_s2 + $0x8] sm:$0xff]  ;;  %v49_v39 = vld [vmem:[%s3742_s2 + $0x18] sm:$0xff]  ;;  %v46_v43 = vld [vmem:[%s3742_s2] sm:$0xff]  ;;  %s2755_s21 = smov 64   ;;  %s2758_s1 = smov [#allocation2]  }
   0xc   :  { %2313 = vmatpush1.bf16.msra.mxu1 %v2871_v18  ;;  %v2126_v40 = vld [vmem:[%s3740_s0 + $0x18] sm:$0xf]  ;;  %v2974_v42 = vpack.c.bf16 %v49_v39, %v47_v38  ;;  %v48_v44 = vld [vmem:[%s3742_s2 + $0x10] sm:$0xff]  ;;  %v51_v45 = vld [vmem:[%s3742_s2 + $0x28] sm:$0xff]  ;;  %v74_v7 = vshrl.u32 %v73_v5, 7  ;;  %s2115_s25 = sshll.u32 %s2758_s1, 4  ;;  %s2116_s25 = int_to_ptr.vmem [resolvable:$true] %s2115_s25 }
   0xd   :  { %2315 = vmatprep.subr.bf16.mxu1 %v2876_v19  ;;  %v53_v46 = vld [vmem:[%s3742_s2 + $0x38] sm:$0xff]  ;;  %v2990_v48 = vpack.c.bf16 %v48_v44, %v46_v43  ;;  %v50_v50 = vld [vmem:[%s3742_s2 + $0x20] sm:$0xff]  ;;  %v52_v51 = vld [vmem:[%s3742_s2 + $0x30] sm:$0xff]  ;;  %s2729_s26 = scalar_lea.vmem %s2116_s25, 32  ;;  %p2734_p1 = scmp.lt.s32.totalorder %s2116_s25, %s2116_s25 }
   0xe   :  { %2301 = vmatpush1.bf16.msra.mxu0 %v2893_v24  ;;  %v2993_v49 = vpack.c.bf16 %v53_v46, %v51_v45  ;;  %v55_v52 = vld [vmem:[%s3742_s2 + $0x48] sm:$0xff]  ;;  %v57_v53 = vld [vmem:[%s3742_s2 + $0x58] sm:$0xff]  ;;  %v3009_v54 = vpack.c.bf16 %v52_v51, %v50_v50  ;;  %v54_v56 = vld [vmem:[%s3742_s2 + $0x40] sm:$0xff]  ;;  %v79_v8 = vsub.s32 1, %v74_v7  ;;  %v75_v20 = vsub.s32 0, %v74_v7  ;;  %p2730_p0 = scmp.ne.s32.totalorder %s2116_s25, %s2729_s26  ;;  %p2735_p2 = scmp.lt.s32.totalorder %s2729_s26, %s2729_s26 }
   0xf   :  { %2303 = vmatprep.subr.bf16.mxu0 %v2896_v25  ;;  %v3013_v55 = vpack.c.bf16 %v57_v53, %v55_v52  ;;  %v56_v57 = vld [vmem:[%s3742_s2 + $0x50] sm:$0xff]  ;;  %v59_v58 = vld [vmem:[%s3742_s2 + $0x68] sm:$0xff]  ;;  %v61_v59 = vld [vmem:[%s3742_s2 + $0x78] sm:$0xff] }
  0x10   :  { %2317 = vmatpush1.bf16.msra.mxu1 %v2893_v24  ;;  %v3028_v60 = vpack.c.bf16 %v56_v57, %v54_v56  ;;  %v3031_v61 = vpack.c.bf16 %v61_v59, %v59_v58  ;;  %v58_v62 = vld [vmem:[%s3742_s2 + $0x60] sm:$0xff]  ;;  %v60_v63 = vld [vmem:[%s3742_s2 + $0x70] sm:$0xff]  ;;  %p2736_p3 = por %p2735_p2, %p2734_p1 }
  0x11   :  { %2319 = vmatprep.subr.bf16.mxu1 %v2896_v25  ;;  %v3040_v2 = vpack.c.bf16 %v60_v63, %v58_v62  ;;  %v62_v9 = vld [vmem:[%s3743_s3] sm:$0x3] }
  0x12   :  { %2305 = vmatpush1.bf16.msra.mxu0 %v2907_v28  ;;  %v3058_v11 = vrot.slane %v62_v9, %v79_v8  ;;  %v3068_v21 = vrot.slane %v62_v9, %v75_v20  ;;  %p2737_p4 = pnand %p2736_p3, %p2730_p0 }
  0x13   :  { %2323 = vmatprep.subr.bf16.mxu0 %v2834_v6 }
  0x14   :  { %2321 = vmatpush1.bf16.msra.mxu1 %v2907_v28 }
  0x15   :  { %2339 = vmatprep.subr.bf16.mxu1 %v2834_v6 }
  0x74   :  { %v68_v30 = vpop.permute.xlu0 %67 }
  0x75   :  { %v71_v31 = vsel %vm70_vm0, %v2919_v29, %v68_v30  ;;  %v409_v36 = vpop.permute.xlu1 %408 }
  0x76   :  { %2124 = vmatmul.mubr.msk.f32.vlgmr.msra.gmra.mrb[0].mxu0 %vm83_vm1, %v71_v31  ;;  %v411_v37 = vsel %vm70_vm0, %v2951_v35, %v409_v36 }
  0x77   :  { %2325 = vmatpush1.bf16.msra.mxu0 %v2845_v10  ;;  %317 = vmatprep.mubr.f32.mxu0 %v2754_v14 }
  0x78   :  { %2327 = vmatprep.subr.bf16.mxu0 %v2859_v15  ;;  %v247_v33 = vpop.permute.xlu0 %246 }
  0x79   :  { %v249_v34 = vsel %vm70_vm0, %v2934_v32, %v247_v33  ;;  %v567_v41 = vpop.permute.xlu1 %566 }
  0x7a   :  { %v569_v47 = vsel %vm70_vm0, %v2126_v40, %v567_v41 }
  0x7b   :  { %2329 = vmatpush1.bf16.msra.mxu0 %v2871_v18 }
  0x7c   :  { %2331 = vmatprep.subr.bf16.mxu0 %v2876_v19 }
  0x7f   :  { %2333 = vmatpush1.bf16.msra.mxu0 %v2893_v24 }
  0x80   :  { %2335 = vmatprep.subr.bf16.mxu0 %v2896_v25 }
  0x83   :  { %2337 = vmatpush1.bf16.msra.mxu0 %v2907_v28 }
  0x84   :  { %2355 = vmatprep.subr.bf16.mxu0 %v2834_v6 }
  0x86   :  { %2130 = vmatmul.mubr.msk.f32.vlgmr.msra.gmra.mrb[2].mxu0 %vm83_vm1, %v249_v34 }
  0x87   :  { %2357 = vmatpush1.bf16.msra.mxu0 %v2845_v10  ;;  %479 = vmatprep.mubr.f32.mxu0 %v2754_v14 }
  0x88   :  { %2359 = vmatprep.subr.bf16.mxu0 %v2859_v15 }
  0x8b   :  { %2361 = vmatpush1.bf16.msra.mxu0 %v2871_v18 }
  0x8c   :  { %2363 = vmatprep.subr.bf16.mxu0 %v2876_v19 }
  0x8f   :  { %2365 = vmatpush1.bf16.msra.mxu0 %v2893_v24 }
  0x90   :  { %2367 = vmatprep.subr.bf16.mxu0 %v2896_v25 }
  0x93   :  { %2369 = vmatpush1.bf16.msra.mxu0 %v2907_v28 }
  0x94   :  { %2387 = vmatprep.subr.bf16.mxu0 %v2834_v6 }
  0x96   :  { %2134 = vmatmul.mubr.msk.f32.vlgmr.msra.gmra.mrb[4].mxu0 %vm83_vm1, %v411_v37 }
  0x97   :  { %2389 = vmatpush1.bf16.msra.mxu0 %v2845_v10  ;;  %637 = vmatprep.mubr.f32.mxu0 %v2754_v14 }
  0x98   :  { %2391 = vmatprep.subr.bf16.mxu0 %v2859_v15 }
  0x9b   :  { %2393 = vmatpush1.bf16.msra.mxu0 %v2871_v18 }
  0x9c   :  { %2395 = vmatprep.subr.bf16.mxu0 %v2876_v19 }
  0x9f   :  { %2397 = vmatpush1.bf16.msra.mxu0 %v2893_v24 }
  0xa0   :  { %2399 = vmatprep.subr.bf16.mxu0 %v2896_v25 }
  0xa3   :  { %2401 = vmatpush1.bf16.msra.mxu0 %v2907_v28 }
  0xa4   :  { %2419 = vmatprep.subr.bf16.mxu0 %v2974_v42 }
  0xa6   :  { %2136 = vmatmul.mubr.msk.f32.vlgmr.msra.gmra.mrb[6].mxu0 %vm83_vm1, %v569_v47 }
  0xa7   :  { %2421 = vmatpush1.bf16.msra.mxu0 %v2990_v48  ;;  %790 = vmatprep.mubr.f32.mxu0 %v2754_v14 }
  0xa8   :  { %2423 = vmatprep.subr.bf16.mxu0 %v2993_v49 }
  0xab   :  { %2425 = vmatpush1.bf16.msra.mxu0 %v3009_v54 }
  0xac   :  { %2427 = vmatprep.subr.bf16.mxu0 %v3013_v55 }
  0xaf   :  { %2429 = vmatpush1.bf16.msra.mxu0 %v3028_v60 }
  0xb0   :  { %2431 = vmatprep.subr.bf16.mxu0 %v3031_v61 }
  0xb3   :  { %2433 = vmatpush1.bf16.msra.mxu0 %v3040_v2 }
  0xb4   :  { %2451 = vmatprep.subr.bf16.mxu0 %v2974_v42 }
  0xb6   :  { %791 = vmatmul.mubr.f32.vlgmr.msra.gmra.mrb[0].mxu0 %v2754_v14 }
  0xb7   :  { %2453 = vmatpush1.bf16.msra.mxu0 %v2990_v48  ;;  %1002 = vmatprep.mubr.f32.mxu0 %v2754_v14 }
  0xb8   :  { %2455 = vmatprep.subr.bf16.mxu0 %v2993_v49 }
  0xbb   :  { %2457 = vmatpush1.bf16.msra.mxu0 %v3009_v54 }
  0xbc   :  { %2459 = vmatprep.subr.bf16.mxu0 %v3013_v55 }
  0xbf   :  { %2461 = vmatpush1.bf16.msra.mxu0 %v3028_v60 }
  0xc0   :  { %2463 = vmatprep.subr.bf16.mxu0 %v3031_v61 }
  0xc3   :  { %2465 = vmatpush1.bf16.msra.mxu0 %v3040_v2 }
  0xc4   :  { %2483 = vmatprep.subr.bf16.mxu0 %v2974_v42 }
 0x189   :  { %v792_v12 = vpop.f32.mrb[0].mxu0 }
 0x18a   :  { %v794_v13 = vpop.f32.mrb[1].mxu0  ;;  %v2590_v22 = vadd.f32 %v792_v12, %v3068_v21 }
 0x18b   :  { %v3061_v16 = vadd.f32 %v794_v13, %v3058_v11 }
 0x18c   :  { %v2138_v23 = vmul.f32 -1.442695, %v2590_v22 }
 0x18d   :  { %2633 = vtanh.f32 %v3061_v16 }
 0x18e   :  { %2635 = vpow2.f32 %v2138_v23 }
 0x197   :  { %v2634_v17 = vpop.eup %2633 }
 0x198   :  { %814 = vrot.lane.b32.xlu0 %v2634_v17, %s2755_s21  ;;  %v2636_v26 = vpop.eup %2635 }
 0x199   :  { %v805_v27 = vadd.f32 1.0, %v2636_v26 }
 0x19b   :  { %2637 = vrcp.f32 %v805_v27 }
 0x19c   :  { %163 = vrot.lane.b32.xlu0 %v2126_v40, %s2753_s11 }
 0x1a0   :  { %487 = vrot.lane.b32.xlu0 %v2934_v32, %s2753_s11 }
 0x1a5   :  { %v2638_v30 = vpop.eup %2637 }
 0x20a   :  { %v815_v31 = vpop.permute.xlu0 %814 }
 0x20b   :  { %v817_v33 = vmul.f32 %v2638_v30, %v815_v31 }
 0x20d   :  { %819 = vrot.lane.b32.xlu1 %v817_v33, %s2755_s21 }
 0x20e   :  { %v164_v34 = vpop.permute.xlu0 %163 }
 0x20f   :  { %v166_v36 = vsel %vm70_vm0, %v2827_v4, %v164_v34  ;;  %v812_v4 = vmul.f32 0.0, %v2638_v30 }
 0x210   :  { %2127 = vmatmul.mubr.msk.f32.vlgmr.msra.gmra.mrb[0].mxu1 %vm83_vm1, %v166_v36 }
 0x211   :  { %329 = vrot.lane.b32.xlu1 %v2951_v35, %s2753_s11  ;;  %2341 = vmatpush1.bf16.msra.mxu1 %v2845_v10 }
 0x212   :  { %2343 = vmatprep.subr.bf16.mxu1 %v2859_v15  ;;  %400 = vmatprep.mubr.f32.mxu1 %v2754_v14 }
 0x215   :  { %645 = vrot.lane.b32.xlu1 %v2919_v29, %s2753_s11  ;;  %2345 = vmatpush1.bf16.msra.mxu1 %v2871_v18 }
 0x216   :  { %2347 = vmatprep.subr.bf16.mxu1 %v2876_v19 }
 0x219   :  { %2349 = vmatpush1.bf16.msra.mxu1 %v2893_v24 }
 0x21a   :  { %2351 = vmatprep.subr.bf16.mxu1 %v2896_v25 }
 0x21d   :  { %2353 = vmatpush1.bf16.msra.mxu1 %v2907_v28 }
 0x21e   :  { %2371 = vmatprep.subr.bf16.mxu1 %v2834_v6 }
 0x27f   :  { %v820_v32 = vpop.permute.xlu1 %819 }
 0x280   :  { %v3088_v35 = vadd.f32 %v820_v32, %v812_v4 }
 0x282   :  { %2639 = vtanh.f32 %v3088_v35 }
 0x283   :  { %v330_v37 = vpop.permute.xlu1 %329 }
 0x284   :  { %v332_v29 = vsel %vm70_vm0, %v2822_v3, %v330_v37  ;;  %v488_v3 = vpop.permute.xlu0 %487 }
 0x285   :  { %2133 = vmatmul.mubr.msk.f32.vlgmr.msra.gmra.mrb[2].mxu1 %vm83_vm1, %v332_v29  ;;  %v490_v39 = vsel %vm70_vm0, %v2812_v1, %v488_v3 }
 0x286   :  { %2373 = vmatpush1.bf16.msra.mxu1 %v2845_v10  ;;  %558 = vmatprep.mubr.f32.mxu1 %v2754_v14 }
 0x287   :  { %2375 = vmatprep.subr.bf16.mxu1 %v2859_v15  ;;  %v646_v40 = vpop.permute.xlu1 %645 }
 0x288   :  { %v648_v1 = vsel %vm70_vm0, %v2807_v0, %v646_v40  ;;  %v2139_v0 = vmul.f32 -1.442695, %v3061_v16 }
 0x28a   :  { %2377 = vmatpush1.bf16.msra.mxu1 %v2871_v18  ;;  %2641 = vpow2.f32 %v2139_v0 }
 0x28b   :  { %2379 = vmatprep.subr.bf16.mxu1 %v2876_v19 }
 0x28c   :  { %v2640_v38 = vpop.eup %2639 }
 0x28d   :  { %825 = vrot.lane.b32.xlu0 %v2640_v38, %s2755_s21 }
 0x28e   :  { %2381 = vmatpush1.bf16.msra.mxu1 %v2893_v24 }
 0x28f   :  { %2383 = vmatprep.subr.bf16.mxu1 %v2896_v25 }
 0x292   :  { %2385 = vmatpush1.bf16.msra.mxu1 %v2907_v28 }
 0x293   :  { %2403 = vmatprep.subr.bf16.mxu1 %v2834_v6 }
 0x294   :  { %v2642_v6 = vpop.eup %2641 }
 0x295   :  { %2135 = vmatmul.mubr.msk.f32.vlgmr.msra.gmra.mrb[4].mxu1 %vm83_vm1, %v490_v39 }
 0x296   :  { %2405 = vmatpush1.bf16.msra.mxu1 %v2845_v10  ;;  %716 = vmatprep.mubr.f32.mxu1 %v2754_v14  ;;  %v806_v10 = vadd.f32 1.0, %v2642_v6 }
 0x297   :  { %2407 = vmatprep.subr.bf16.mxu1 %v2859_v15 }
 0x298   :  { %2643 = vrcp.f32 %v806_v10 }
 0x29a   :  { %2409 = vmatpush1.bf16.msra.mxu1 %v2871_v18 }
 0x29b   :  { %2411 = vmatprep.subr.bf16.mxu1 %v2876_v19 }
 0x29e   :  { %2413 = vmatpush1.bf16.msra.mxu1 %v2893_v24 }
 0x29f   :  { %2415 = vmatprep.subr.bf16.mxu1 %v2896_v25 }
 0x2a2   :  { %2417 = vmatpush1.bf16.msra.mxu1 %v2907_v28  ;;  %v2644_v15 = vpop.eup %2643 }
 0x2a3   :  { %2435 = vmatprep.subr.bf16.mxu1 %v2974_v42 }
 0x2a5   :  { %2137 = vmatmul.mubr.msk.f32.vlgmr.msra.gmra.mrb[6].mxu1 %vm83_vm1, %v648_v1 }
 0x2a6   :  { %2437 = vmatpush1.bf16.msra.mxu1 %v2990_v48  ;;  %896 = vmatprep.mubr.f32.mxu1 %v2754_v14 }
 0x2a7   :  { %2439 = vmatprep.subr.bf16.mxu1 %v2993_v49 }
 0x2aa   :  { %2441 = vmatpush1.bf16.msra.mxu1 %v3009_v54 }
 0x2ab   :  { %2443 = vmatprep.subr.bf16.mxu1 %v3013_v55 }
 0x2ae   :  { %2445 = vmatpush1.bf16.msra.mxu1 %v3028_v60 }
 0x2af   :  { %2447 = vmatprep.subr.bf16.mxu1 %v3031_v61 }
 0x2b2   :  { %2449 = vmatpush1.bf16.msra.mxu1 %v3040_v2 }
 0x2b3   :  { %2467 = vmatprep.subr.bf16.mxu1 %v2974_v42 }
 0x2ff   :  { %v826_v18 = vpop.permute.xlu0 %825 }
 0x300   :  { %v3129_v19 = vmul.f32 %v2644_v15, %v826_v18 }
 0x302   :  { %2140 = vmatmul.mubr.msk.f32.vlgmr.msra.gmra.mrb[0].mxu1 %vm83_vm1, %v3129_v19 }
 0x303   :  { %2469 = vmatpush1.bf16.msra.mxu1 %v2990_v48  ;;  %1108 = vmatprep.mubr.f32.mxu1 %v2754_v14 }
 0x304   :  { %2471 = vmatprep.subr.bf16.mxu1 %v2993_v49 }
 0x307   :  { %2473 = vmatpush1.bf16.msra.mxu1 %v3009_v54 }
 0x308   :  { %2475 = vmatprep.subr.bf16.mxu1 %v3013_v55 }
 0x30b   :  { %2477 = vmatpush1.bf16.msra.mxu1 %v3028_v60 }
 0x30c   :  { %2479 = vmatprep.subr.bf16.mxu1 %v3031_v61 }
 0x30f   :  { %2481 = vmatpush1.bf16.msra.mxu1 %v3040_v2 }
 0x310   :  { %2499 = vmatprep.subr.bf16.mxu1 %v2974_v42 }
 0x3d5   :  { %v898_v24 = vpop.f32.mrb[0].mxu1 }
 0x3d6   :  { %v900_v25 = vpop.f32.mrb[1].mxu1  ;;  %v2592_v43 = vadd.f32 %v898_v24, %v3068_v21 }
 0x3d7   :  { %v2593_v28 = vadd.f32 %v900_v25, %v3058_v11 }
 0x3d8   :  { %v2141_v44 = vmul.f32 -1.442695, %v2592_v43 }
 0x3d9   :  { %2645 = vtanh.f32 %v2593_v28  ;;  %v2142_v58 = vmul.f32 -1.442695, %v2593_v28 }
 0x3da   :  { %2647 = vpow2.f32 %v2141_v44 }
 0x3e3   :  { %v2646_v41 = vpop.eup %2645 }
 0x3e4   :  { %920 = vrot.lane.b32.xlu1 %v2646_v41, %s2755_s21  ;;  %v2648_v45 = vpop.eup %2647 }
 0x3e5   :  { %v911_v46 = vadd.f32 1.0, %v2648_v45 }
 0x3e7   :  { %2649 = vrcp.f32 %v911_v46 }
 0x3f1   :  { %v2650_v47 = vpop.eup %2649 }
 0x3f2   :  { %v918_v52 = vmul.f32 %v2650_v47, %v3088_v35 }
 0x456   :  { %v921_v50 = vpop.permute.xlu1 %920 }
 0x457   :  { %v923_v51 = vmul.f32 %v2650_v47, %v921_v50 }
 0x459   :  { %925 = vrot.lane.b32.xlu0 %v923_v51, %s2755_s21 }
 0x4cb   :  { %v926_v53 = vpop.permute.xlu0 %925 }
 0x4cc   :  { %v928_v56 = vadd.f32 %v926_v53, %v918_v52 }
 0x4ce   :  { %2651 = vtanh.f32 %v928_v56 }
 0x4cf   :  { %2653 = vpow2.f32 %v2142_v58 }
 0x4d8   :  { %v2652_v57 = vpop.eup %2651 }
 0x4d9   :  { %931 = vrot.lane.b32.xlu1 %v2652_v57, %s2755_s21  ;;  %v2654_v59 = vpop.eup %2653 }
 0x4da   :  { %v912_v62 = vadd.f32 1.0, %v2654_v59 }
 0x4dc   :  { %2655 = vrcp.f32 %v912_v62 }
 0x4e6   :  { %v2656_v63 = vpop.eup %2655 }
 0x54b   :  { %v932_v5 = vpop.permute.xlu1 %931 }
 0x54c   :  { %v3148_v7 = vmul.f32 %v2656_v63, %v932_v5 }
 0x54e   :  { %2143 = vmatmul.mubr.msk.f32.vlgmr.msra.gmra.mrb[2].mxu0 %vm83_vm1, %v3148_v7 }
 0x54f   :  { %2485 = vmatpush1.bf16.msra.mxu0 %v2990_v48  ;;  %1214 = vmatprep.mubr.f32.mxu0 %v2754_v14 }
 0x550   :  { %2487 = vmatprep.subr.bf16.mxu0 %v2993_v49 }
 0x553   :  { %2489 = vmatpush1.bf16.msra.mxu0 %v3009_v54 }
 0x554   :  { %2491 = vmatprep.subr.bf16.mxu0 %v3013_v55 }
 0x557   :  { %2493 = vmatpush1.bf16.msra.mxu0 %v3028_v60 }
 0x558   :  { %2495 = vmatprep.subr.bf16.mxu0 %v3031_v61 }
 0x55b   :  { %2497 = vmatpush1.bf16.msra.mxu0 %v3040_v2 }
 0x55c   :  { %2515 = vmatprep.subr.bf16.mxu0 %v2974_v42 }
 0x621   :  { %v1004_v8 = vpop.f32.mrb[2].mxu0 }
 0x622   :  { %v1006_v9 = vpop.f32.mrb[3].mxu0  ;;  %v2594_v16 = vadd.f32 %v1004_v8, %v3068_v21 }
 0x623   :  { %v2595_v12 = vadd.f32 %v1006_v9, %v3058_v11 }
 0x624   :  { %v2144_v17 = vmul.f32 -1.442695, %v2594_v16 }
 0x625   :  { %2657 = vtanh.f32 %v2595_v12  ;;  %v2145_v36 = vmul.f32 -1.442695, %v2595_v12 }
 0x626   :  { %2659 = vpow2.f32 %v2144_v17 }
 0x62f   :  { %v2658_v13 = vpop.eup %2657 }
 0x630   :  { %1026 = vrot.lane.b32.xlu0 %v2658_v13, %s2755_s21  ;;  %v2660_v20 = vpop.eup %2659 }
 0x631   :  { %v1017_v22 = vadd.f32 1.0, %v2660_v20 }
 0x633   :  { %2661 = vrcp.f32 %v1017_v22 }
 0x63d   :  { %v2662_v23 = vpop.eup %2661 }
 0x63e   :  { %v1024_v30 = vmul.f32 %v2662_v23, %v928_v56 }
 0x6a2   :  { %v1027_v26 = vpop.permute.xlu0 %1026 }
 0x6a3   :  { %v1029_v27 = vmul.f32 %v2662_v23, %v1027_v26 }
 0x6a5   :  { %1031 = vrot.lane.b32.xlu1 %v1029_v27, %s2755_s21 }
 0x717   :  { %v1032_v31 = vpop.permute.xlu1 %1031 }
 0x718   :  { %v1034_v33 = vadd.f32 %v1032_v31, %v1024_v30 }
 0x71a   :  { %2663 = vtanh.f32 %v1034_v33 }
 0x71b   :  { %2665 = vpow2.f32 %v2145_v36 }
 0x724   :  { %v2664_v34 = vpop.eup %2663 }
 0x725   :  { %1037 = vrot.lane.b32.xlu0 %v2664_v34, %s2755_s21  ;;  %v2666_v4 = vpop.eup %2665 }
 0x726   :  { %v1018_v32 = vadd.f32 1.0, %v2666_v4 }
 0x728   :  { %2667 = vrcp.f32 %v1018_v32 }
 0x732   :  { %v2668_v35 = vpop.eup %2667 }
 0x797   :  { %v1038_v37 = vpop.permute.xlu0 %1037 }
 0x798   :  { %v3166_v29 = vmul.f32 %v2668_v35, %v1038_v37 }
 0x79a   :  { %2146 = vmatmul.mubr.msk.f32.vlgmr.msra.gmra.mrb[2].mxu1 %vm83_vm1, %v3166_v29 }
 0x79b   :  { %2501 = vmatpush1.bf16.msra.mxu1 %v2990_v48  ;;  %1320 = vmatprep.mubr.f32.mxu1 %v2754_v14 }
 0x79c   :  { %2503 = vmatprep.subr.bf16.mxu1 %v2993_v49 }
 0x79f   :  { %2505 = vmatpush1.bf16.msra.mxu1 %v3009_v54 }
 0x7a0   :  { %2507 = vmatprep.subr.bf16.mxu1 %v3013_v55 }
 0x7a3   :  { %2509 = vmatpush1.bf16.msra.mxu1 %v3028_v60 }
 0x7a4   :  { %2511 = vmatprep.subr.bf16.mxu1 %v3031_v61 }
 0x7a7   :  { %2513 = vmatpush1.bf16.msra.mxu1 %v3040_v2 }
 0x7a8   :  { %2531 = vmatprep.subr.bf16.mxu1 %v2974_v42 }
 0x86d   :  { %v1110_v38 = vpop.f32.mrb[2].mxu1 }
 0x86e   :  { %v1112_v3 = vpop.f32.mrb[3].mxu1  ;;  %v2596_v1 = vadd.f32 %v1110_v38, %v3068_v21 }
 0x86f   :  { %v2597_v39 = vadd.f32 %v1112_v3, %v3058_v11 }
 0x870   :  { %v2147_v0 = vmul.f32 -1.442695, %v2596_v1 }
 0x871   :  { %2669 = vtanh.f32 %v2597_v39  ;;  %v2148_v43 = vmul.f32 -1.442695, %v2597_v39 }
 0x872   :  { %2671 = vpow2.f32 %v2147_v0 }
 0x87b   :  { %v2670_v40 = vpop.eup %2669 }
 0x87c   :  { %1132 = vrot.lane.b32.xlu1 %v2670_v40, %s2755_s21  ;;  %v2672_v6 = vpop.eup %2671 }
 0x87d   :  { %v1123_v10 = vadd.f32 1.0, %v2672_v6 }
 0x87f   :  { %2673 = vrcp.f32 %v1123_v10 }
 0x889   :  { %v2674_v15 = vpop.eup %2673 }
 0x88a   :  { %v1130_v42 = vmul.f32 %v2674_v15, %v1034_v33 }
 0x8ee   :  { %v1133_v18 = vpop.permute.xlu1 %1132 }
 0x8ef   :  { %v1135_v24 = vmul.f32 %v2674_v15, %v1133_v18 }
 0x8f1   :  { %1137 = vrot.lane.b32.xlu0 %v1135_v24, %s2755_s21 }
 0x963   :  { %v1138_v25 = vpop.permute.xlu0 %1137 }
 0x964   :  { %v1140_v28 = vadd.f32 %v1138_v25, %v1130_v42 }
 0x966   :  { %2675 = vtanh.f32 %v1140_v28 }
 0x967   :  { %2677 = vpow2.f32 %v2148_v43 }
 0x970   :  { %v2676_v41 = vpop.eup %2675 }
 0x971   :  { %1143 = vrot.lane.b32.xlu1 %v2676_v41, %s2755_s21  ;;  %v2678_v44 = vpop.eup %2677 }
 0x972   :  { %v1124_v45 = vadd.f32 1.0, %v2678_v44 }
 0x974   :  { %2679 = vrcp.f32 %v1124_v45 }
 0x97e   :  { %v2680_v46 = vpop.eup %2679 }
 0x9e3   :  { %v1144_v47 = vpop.permute.xlu1 %1143 }
 0x9e4   :  { %v3184_v50 = vmul.f32 %v2680_v46, %v1144_v47 }
 0x9e6   :  { %2149 = vmatmul.mubr.msk.f32.vlgmr.msra.gmra.mrb[4].mxu0 %vm83_vm1, %v3184_v50 }
 0x9e7   :  { %2517 = vmatpush1.bf16.msra.mxu0 %v2990_v48  ;;  %1426 = vmatprep.mubr.f32.mxu0 %v2754_v14 }
 0x9e8   :  { %2519 = vmatprep.subr.bf16.mxu0 %v2993_v49 }
 0x9eb   :  { %2521 = vmatpush1.bf16.msra.mxu0 %v3009_v54 }
 0x9ec   :  { %2523 = vmatprep.subr.bf16.mxu0 %v3013_v55 }
 0x9ef   :  { %2525 = vmatpush1.bf16.msra.mxu0 %v3028_v60 }
 0x9f0   :  { %2527 = vmatprep.subr.bf16.mxu0 %v3031_v61 }
 0x9f3   :  { %2529 = vmatpush1.bf16.msra.mxu0 %v3040_v2 }
 0xab9   :  { %v1216_v51 = vpop.f32.mrb[4].mxu0 }
 0xaba   :  { %v1218_v52 = vpop.f32.mrb[5].mxu0  ;;  %v2598_v57 = vadd.f32 %v1216_v51, %v3068_v21 }
 0xabb   :  { %v2599_v53 = vadd.f32 %v1218_v52, %v3058_v11 }
 0xabc   :  { %v2150_v58 = vmul.f32 -1.442695, %v2598_v57 }
 0xabd   :  { %2681 = vtanh.f32 %v2599_v53  ;;  %v2151_v17 = vmul.f32 -1.442695, %v2599_v53 }
 0xabe   :  { %2683 = vpow2.f32 %v2150_v58 }
 0xac7   :  { %v2682_v56 = vpop.eup %2681 }
 0xac8   :  { %1238 = vrot.lane.b32.xlu0 %v2682_v56, %s2755_s21  ;;  %v2684_v59 = vpop.eup %2683 }
 0xac9   :  { %v1229_v62 = vadd.f32 1.0, %v2684_v59 }
 0xacb   :  { %2685 = vrcp.f32 %v1229_v62 }
 0xad5   :  { %v2686_v63 = vpop.eup %2685 }
 0xad6   :  { %v1236_v9 = vmul.f32 %v2686_v63, %v1140_v28 }
 0xb3a   :  { %v1239_v5 = vpop.permute.xlu0 %1238 }
 0xb3b   :  { %v1241_v8 = vmul.f32 %v2686_v63, %v1239_v5 }
 0xb3d   :  { %1243 = vrot.lane.b32.xlu1 %v1241_v8, %s2755_s21 }
 0xbaf   :  { %v1244_v12 = vpop.permute.xlu1 %1243 }
 0xbb0   :  { %v1246_v13 = vadd.f32 %v1244_v12, %v1236_v9 }
 0xbb2   :  { %2687 = vtanh.f32 %v1246_v13 }
 0xbb3   :  { %2689 = vpow2.f32 %v2151_v17 }
 0xbbc   :  { %v2688_v16 = vpop.eup %2687 }
 0xbbd   :  { %1249 = vrot.lane.b32.xlu0 %v2688_v16, %s2755_s21  ;;  %v2690_v20 = vpop.eup %2689 }
 0xbbe   :  { %v1230_v22 = vadd.f32 1.0, %v2690_v20 }
 0xbc0   :  { %2691 = vrcp.f32 %v1230_v22 }
 0xbca   :  { %v2692_v23 = vpop.eup %2691 }
 0xc2f   :  { %v1250_v26 = vpop.permute.xlu0 %1249 }
 0xc30   :  { %v3201_v27 = vmul.f32 %v2692_v23, %v1250_v26 }
 0xc32   :  { %2152 = vmatmul.mubr.msk.f32.vlgmr.msra.gmra.mrb[4].mxu1 %vm83_vm1, %v3201_v27 }
 0xc33   :  { %2533 = vmatpush1.bf16.msra.mxu1 %v2990_v48  ;;  %1532 = vmatprep.mubr.f32.mxu1 %v2754_v14 }
 0xc34   :  { %2535 = vmatprep.subr.bf16.mxu1 %v2993_v49 }
 0xc37   :  { %2537 = vmatpush1.bf16.msra.mxu1 %v3009_v54 }
 0xc38   :  { %2539 = vmatprep.subr.bf16.mxu1 %v3013_v55 }
 0xc3b   :  { %2541 = vmatpush1.bf16.msra.mxu1 %v3028_v60 }
 0xc3c   :  { %2543 = vmatprep.subr.bf16.mxu1 %v3031_v61 }
 0xc3f   :  { %2545 = vmatpush1.bf16.msra.mxu1 %v3040_v2 }
 0xd05   :  { %v1322_v30 = vpop.f32.mrb[4].mxu1 }
 0xd06   :  { %v1324_v31 = vpop.f32.mrb[5].mxu1  ;;  %v2600_v49 = vadd.f32 %v1322_v30, %v3068_v21  ;;  %v1926_v30 = vld [vmem:[%s3744_s4 + $0x88] sm:$0xff] }
 0xd07   :  { %v2601_v33 = vadd.f32 %v1324_v31, %v3058_v11  ;;  %v1909_v31 = vld [vmem:[%s3744_s4] sm:$0xff] }
 0xd08   :  { %v2153_v34 = vmul.f32 -1.442695, %v2600_v49  ;;  %v1927_v49 = vld [vmem:[%s3744_s4 + $0x90] sm:$0xff] }
 0xd09   :  { %2693 = vtanh.f32 %v2601_v33  ;;  %v2154_v37 = vmul.f32 -1.442695, %v2601_v33 }
 0xd0a   :  { %2695 = vpow2.f32 %v2153_v34  ;;  %v1928_v34 = vld [vmem:[%s3744_s4 + $0x98] sm:$0xff] }
 0xd13   :  { %v2694_v48 = vpop.eup %2693 }
 0xd14   :  { %1344 = vrot.lane.b32.xlu1 %v2694_v48, %s2755_s21  ;;  %v2696_v54 = vpop.eup %2695  ;;  %v1910_v48 = vld [vmem:[%s3744_s4 + $0x8] sm:$0xff] }
 0xd15   :  { %v1335_v55 = vadd.f32 1.0, %v2696_v54  ;;  %v2548_v54 = vpack.c.bf16 %v1910_v48, %v1909_v31 }
 0xd17   :  { %2697 = vrcp.f32 %v1335_v55  ;;  %v2550_v55 = vpack.c.bf16 %v1928_v34, %v1927_v49 }
 0xd21   :  { %v2698_v60 = vpop.eup %2697 }
 0xd22   :  { %v1342_v2 = vmul.f32 %v2698_v60, %v1246_v13 }
 0xd86   :  { %v1345_v36 = vpop.permute.xlu1 %1344 }
 0xd87   :  { %v1347_v61 = vmul.f32 %v2698_v60, %v1345_v36  ;;  %v1911_v60 = vld [vmem:[%s3744_s4 + $0x10] sm:$0xff]  ;;  %v1912_v36 = vld [vmem:[%s3744_s4 + $0x18] sm:$0xff] }
 0xd89   :  { %1349 = vrot.lane.b32.xlu0 %v1347_v61, %s2755_s21  ;;  %v1929_v61 = vld [vmem:[%s3744_s4 + $0xa0] sm:$0xff] }
 0xdfb   :  { %v1350_v4 = vpop.permute.xlu0 %1349 }
 0xdfc   :  { %v1352_v32 = vadd.f32 %v1350_v4, %v1342_v2  ;;  %v1930_v2 = vld [vmem:[%s3744_s4 + $0xa8] sm:$0xff]  ;;  %v2552_v4 = vpack.c.bf16 %v1912_v36, %v1911_v60 }
 0xdfe   :  { %2699 = vtanh.f32 %v1352_v32 }
 0xdff   :  { %2701 = vpow2.f32 %v2154_v37  ;;  %v1914_v37 = vld [vmem:[%s3744_s4 + $0x28] sm:$0xff] }
 0xe08   :  { %v2700_v35 = vpop.eup %2699 }
 0xe09   :  { %1355 = vrot.lane.b32.xlu1 %v2700_v35, %s2755_s21  ;;  %v2702_v38 = vpop.eup %2701  ;;  %v1913_v35 = vld [vmem:[%s3744_s4 + $0x20] sm:$0xff] }
 0xe0a   :  { %v1336_v3 = vadd.f32 1.0, %v2702_v38  ;;  %v1931_v38 = vld [vmem:[%s3744_s4 + $0xb0] sm:$0xff] }
 0xe0c   :  { %2703 = vrcp.f32 %v1336_v3  ;;  %v1932_v3 = vld [vmem:[%s3744_s4 + $0xb8] sm:$0xff] }
 0xe16   :  { %v2704_v39 = vpop.eup %2703 }
 0xe7b   :  { %v1356_v40 = vpop.permute.xlu1 %1355 }
 0xe7c   :  { %v3218_v1 = vmul.f32 %v2704_v39, %v1356_v40  ;;  %v2556_v39 = vpack.c.bf16 %v1914_v37, %v1913_v35  ;;  %v2558_v40 = vpack.c.bf16 %v1932_v3, %v1931_v38 }
 0xe7e   :  { %2155 = vmatmul.mubr.msk.f32.vlgmr.msra.gmra.mrb[6].mxu0 %vm83_vm1, %v3218_v1 }
 0xf51   :  { %v1428_v0 = vpop.f32.mrb[6].mxu0 }
 0xf52   :  { %v1430_v6 = vpop.f32.mrb[7].mxu0  ;;  %v2602_v18 = vadd.f32 %v1428_v0, %v3068_v21  ;;  %v1915_v0 = vld [vmem:[%s3744_s4 + $0x30] sm:$0xff] }
 0xf53   :  { %v2603_v10 = vadd.f32 %v1430_v6, %v3058_v11  ;;  %v1916_v6 = vld [vmem:[%s3744_s4 + $0x38] sm:$0xff] }
 0xf54   :  { %v2156_v24 = vmul.f32 -1.442695, %v2602_v18  ;;  %v2560_v18 = vpack.c.bf16 %v1916_v6, %v1915_v0 }
 0xf55   :  { %2705 = vtanh.f32 %v2603_v10  ;;  %v2157_v51 = vmul.f32 -1.442695, %v2603_v10  ;;  %v1933_v10 = vld [vmem:[%s3744_s4 + $0xc0] sm:$0xff] }
 0xf56   :  { %2707 = vpow2.f32 %v2156_v24 }
 0xf5f   :  { %v2706_v15 = vpop.eup %2705 }
 0xf60   :  { %1450 = vrot.lane.b32.xlu0 %v2706_v15, %s2755_s21  ;;  %v2708_v42 = vpop.eup %2707  ;;  %v1934_v15 = vld [vmem:[%s3744_s4 + $0xc8] sm:$0xff] }
 0xf61   :  { %v1441_v25 = vadd.f32 1.0, %v2708_v42  ;;  %v2562_v24 = vpack.c.bf16 %v1934_v15, %v1933_v10  ;;  %v1917_v42 = vld [vmem:[%s3744_s4 + $0x40] sm:$0xff] }
 0xf63   :  { %2709 = vrcp.f32 %v1441_v25  ;;  %v1918_v25 = vld [vmem:[%s3744_s4 + $0x48] sm:$0xff] }
 0xf6d   :  { %v2710_v28 = vpop.eup %2709 }
 0xf6e   :  { %v1448_v44 = vmul.f32 %v2710_v28, %v1352_v32  ;;  %v2554_v32 = vpack.c.bf16 %v1930_v2, %v1929_v61 }
 0xfd2   :  { %v1451_v41 = vpop.permute.xlu0 %1450 }
 0xfd3   :  { %v1453_v43 = vmul.f32 %v2710_v28, %v1451_v41  ;;  %v1935_v28 = vld [vmem:[%s3744_s4 + $0xd0] sm:$0xff]  ;;  %v1936_v41 = vld [vmem:[%s3744_s4 + $0xd8] sm:$0xff] }
 0xfd5   :  { %1455 = vrot.lane.b32.xlu1 %v1453_v43, %s2755_s21  ;;  %v2564_v43 = vpack.c.bf16 %v1918_v25, %v1917_v42 }
0x1047   :  { %v1456_v45 = vpop.permute.xlu1 %1455 }
0x1048   :  { %v1458_v46 = vadd.f32 %v1456_v45, %v1448_v44  ;;  %v2566_v44 = vpack.c.bf16 %v1936_v41, %v1935_v28  ;;  %v1919_v45 = vld [vmem:[%s3744_s4 + $0x50] sm:$0xff] }
0x104a   :  { %2711 = vtanh.f32 %v1458_v46 }
0x104b   :  { %2713 = vpow2.f32 %v2157_v51  ;;  %v1938_v51 = vld [vmem:[%s3744_s4 + $0xe8] sm:$0xff] }
0x1054   :  { %v2712_v47 = vpop.eup %2711 }
0x1055   :  { %1461 = vrot.lane.b32.xlu0 %v2712_v47, %s2755_s21  ;;  %v2714_v52 = vpop.eup %2713  ;;  %v1937_v47 = vld [vmem:[%s3744_s4 + $0xe0] sm:$0xff] }
0x1056   :  { %v1442_v53 = vadd.f32 1.0, %v2714_v52 }
0x1058   :  { %2715 = vrcp.f32 %v1442_v53  ;;  %v2570_v53 = vpack.c.bf16 %v1938_v51, %v1937_v47 }
0x1062   :  { %v2716_v56 = vpop.eup %2715 }
0x10c7   :  { %v1462_v57 = vpop.permute.xlu0 %1461 }
0x10c8   :  { %v3227_v58 = vmul.f32 %v2716_v56, %v1462_v57  ;;  %v1921_v56 = vld [vmem:[%s3744_s4 + $0x60] sm:$0xff]  ;;  %v1922_v57 = vld [vmem:[%s3744_s4 + $0x68] sm:$0xff] }
0x10ca   :  { %2158 = vmatmul.mubr.msk.f32.vlgmr.msra.gmra.mrb[6].mxu1 %vm83_vm1, %v3227_v58 }
0x119d   :  { %v1534_v59 = vpop.f32.mrb[6].mxu1 }
0x119e   :  { %v1536_v62 = vpop.f32.mrb[7].mxu1  ;;  %v2604_v8 = vadd.f32 %v1534_v59, %v3068_v21  ;;  %v1925_v21 = vld [vmem:[%s3744_s4 + $0x80] sm:$0xff]  ;;  %v2572_v59 = vpack.c.bf16 %v1922_v57, %v1921_v56 }
0x119f   :  { %v3232_v63 = vadd.f32 %v1536_v62, %v3058_v11  ;;  %v2546_v33 = vpack.c.bf16 %v1926_v30, %v1925_v21 }
0x11a0   :  { %v2159_v9 = vmul.f32 -1.442695, %v2604_v8  ;;  %v3327_v8 = vsel %vm70_vm0, %v3184_v50, %v3201_v27 }
0x11a1   :  { %2717 = vtanh.f32 %v3232_v63  ;;  %2547 = vmatprep.subr.bf16.mxu0 %v2546_v33  ;;  %v2160_v62 = vmul.f32 -1.442695, %v3232_v63  ;;  %v3342_v63 = vsel %vm70_vm0, %v3218_v1, %v3166_v29 }
0x11a2   :  { %2719 = vpow2.f32 %v2159_v9  ;;  %2549 = vmatpush3.bf16.msra.mxu0 %v2548_v54  ;;  %v3332_v9 = vsel %vm70_vm0, %v3201_v27, %v3184_v50  ;;  %v3363_v27 = vsel %vm70_vm0, %v3148_v7, %v3227_v58  ;;  %vm1679_vm8 = vcmp.gt.f32.partialorder %v3342_v63, %v3327_v8 }
0x11a3   :  { %2551 = vmatprep.subr.bf16.mxu0 %v2550_v55  ;;  %vm1675_vm2 = vcmp.gt.f32.partialorder %v3332_v9, %v3327_v8  ;;  %vm1703_vm3 = vcmp.ge.f32.partialorder %v3327_v8, %v3332_v9  ;;  %vm1707_vm10 = vcmp.gt.f32.partialorder %v3342_v63, %v3332_v9  ;;  %vm1731_vm12 = vcmp.ge.f32.partialorder %v3327_v8, %v3342_v63 }
0x11a4   :  { %v3355_v50 = vsel %vm1675_vm2, 1.0, %v2754_v14  ;;  %vm1735_vm13 = vcmp.ge.f32.partialorder %v3332_v9, %v3342_v63  ;;  %vm1615_vm15 = vcmp.gt.f32.partialorder %v3327_v8, %v3363_v27  ;;  %vm1619_vm2 = vcmp.gt.f32.partialorder %v3332_v9, %v3363_v27 }
0x11a5   :  { %v3422_v21 = vsel %vm1735_vm13, 1.0, %v2754_v14  ;;  %v2170_v31 = vsel %vm1615_vm15, 1.0, %v2754_v14  ;;  %v2171_v33 = vsel %vm1619_vm2, 1.0, %v2754_v14 }
0x11a6   :  { %2553 = vmatpush3.bf16.msra.mxu0 %v2552_v4 }
0x11a7   :  { %2555 = vmatprep.subr.bf16.mxu0 %v2554_v32 }
0x11aa   :  { %2557 = vmatpush3.bf16.msra.mxu0 %v2556_v39 }
0x11ab   :  { %v2718_v5 = vpop.eup %2717  ;;  %2559 = vmatprep.subr.bf16.mxu0 %v2558_v40 }
0x11ac   :  { %1556 = vrot.lane.b32.xlu1 %v2718_v5, %s2755_s21  ;;  %v2720_v12 = vpop.eup %2719 }
0x11ad   :  { %v1547_v13 = vadd.f32 1.0, %v2720_v12  ;;  %v3337_v12 = vsel %vm70_vm0, %v3166_v29, %v3218_v1  ;;  %v3358_v29 = vsel %vm1703_vm3, 1.0, %v2754_v14  ;;  %vm1623_vm3 = vcmp.gt.f32.partialorder %v3342_v63, %v3363_v27 }
0x11ae   :  { %2561 = vmatpush3.bf16.msra.mxu0 %v2560_v18  ;;  %vm1643_vm4 = vcmp.gt.f32.partialorder %v3327_v8, %v3337_v12  ;;  %vm1647_vm5 = vcmp.gt.f32.partialorder %v3332_v9, %v3337_v12  ;;  %vm1651_vm6 = vcmp.gt.f32.partialorder %v3342_v63, %v3337_v12  ;;  %vm1671_vm7 = vcmp.ge.f32.partialorder %v3337_v12, %v3327_v8 }
0x11af   :  { %2721 = vrcp.f32 %v1547_v13  ;;  %2563 = vmatprep.subr.bf16.mxu0 %v2562_v24  ;;  %v3366_v1 = vsel %vm1643_vm4, 1.0, %v2754_v14  ;;  %vm1699_vm9 = vcmp.ge.f32.partialorder %v3337_v12, %v3332_v9  ;;  %vm1727_vm11 = vcmp.ge.f32.partialorder %v3337_v12, %v3342_v63 }
0x11b0   :  { %vm1611_vm14 = vcmp.gt.f32.partialorder %v3337_v12, %v3363_v27  ;;  %v3438_v48 = vsel %vm1623_vm3, 1.0, %v2754_v14 }
0x11b1   :  { %v2169_v30 = vsel %vm1611_vm14, 1.0, %v2754_v14 }
0x11b2   :  { %2565 = vmatpush3.bf16.msra.mxu0 %v2564_v43 }
0x11b3   :  { %2567 = vmatprep.subr.bf16.mxu0 %v2566_v44 }
0x11b9   :  { %v2722_v16 = vpop.eup %2721 }
0x11ba   :  { %v1554_v22 = vmul.f32 %v2722_v16, %v1458_v46  ;;  %v1920_v46 = vld [vmem:[%s3744_s4 + $0x58] sm:$0xff] }
0x11bb   :  { %v2568_v52 = vpack.c.bf16 %v1920_v46, %v1919_v45 }
0x11bd   :  { %2569 = vmatpush3.bf16.msra.mxu0 %v2568_v52 }
0x11be   :  { %2571 = vmatprep.subr.bf16.mxu0 %v2570_v53 }
0x11c1   :  { %2573 = vmatpush3.bf16.msra.mxu0 %v2572_v59 }
0x121e   :  { %v1557_v17 = vpop.permute.xlu1 %1556 }
0x121f   :  { %v1559_v20 = vmul.f32 %v2722_v16, %v1557_v17  ;;  %v3373_v16 = vsel %vm1647_vm5, 1.0, %v2754_v14  ;;  %v3384_v17 = vsel %vm70_vm0, %v3227_v58, %v3148_v7  ;;  %v3401_v7 = vsel %vm1679_vm8, 1.0, %v2754_v14 }
0x1220   :  { %v3406_v58 = vsel %vm1699_vm9, 1.0, %v2754_v14  ;;  %vm1627_vm4 = vcmp.gt.f32.partialorder %v3384_v17, %v3363_v27  ;;  %vm1639_vm5 = vcmp.ge.f32.partialorder %v3363_v27, %v3337_v12  ;;  %vm1683_vm8 = vcmp.gt.f32.partialorder %v3384_v17, %v3327_v8 }
0x1221   :  { %1561 = vrot.lane.b32.xlu0 %v1559_v20, %s2755_s21  ;;  %v3387_v20 = vsel %vm1651_vm6, 1.0, %v2754_v14  ;;  %vm1655_vm6 = vcmp.gt.f32.partialorder %v3384_v17, %v3337_v12  ;;  %vm1695_vm9 = vcmp.ge.f32.partialorder %v3363_v27, %v3332_v9  ;;  %v3441_v49 = vsel %vm1627_vm4, 1.0, %v2754_v14 }
0x1222   :  { %v2176_v55 = vsel %vm1639_vm5, 1.0, %v2754_v14  ;;  %v3449_v60 = vsel %vm1655_vm6, 1.0, %v2754_v14  ;;  %vm1751_vm13 = vcmp.ge.f32.partialorder %v3363_v27, %v3384_v17  ;;  %v3457_v2 = vsel %vm1683_vm8, 1.0, %v2754_v14 }
0x1223   :  { %v2190_v4 = vsel %vm1695_vm9, 1.0, %v2754_v14  ;;  %vm1755_vm14 = vcmp.ge.f32.partialorder %v3337_v12, %v3384_v17  ;;  %vm1759_vm15 = vcmp.ge.f32.partialorder %v3327_v8, %v3384_v17  ;;  %v3476_v3 = vsel %vm1751_vm13, 1.0, %v2754_v14 }
0x1224   :  { %vm1763_vm2 = vcmp.ge.f32.partialorder %v3332_v9, %v3384_v17  ;;  %vm1767_vm6 = vcmp.ge.f32.partialorder %v3342_v63, %v3384_v17  ;;  %v3491_v0 = vsel %vm1755_vm14, 1.0, %v2754_v14  ;;  %v3494_v6 = vsel %vm1759_vm15, 1.0, %v2754_v14 }
0x1225   :  { %v3503_v18 = vsel %vm1763_vm2, 1.0, %v2754_v14  ;;  %v3511_v42 = vsel %vm1767_vm6, 1.0, %v2754_v14 }
0x1293   :  { %v1562_v11 = vpop.permute.xlu0 %1561 }
0x1294   :  { %v1564_v23 = vadd.f32 %v1562_v11, %v1554_v22  ;;  %v3398_v22 = vsel %vm1671_vm7, 1.0, %v2754_v14  ;;  %v3409_v11 = vsel %vm1707_vm10, 1.0, %v2754_v14  ;;  %vm1667_vm7 = vcmp.ge.f32.partialorder %v3363_v27, %v3327_v8 }
0x1295   :  { %vm1711_vm10 = vcmp.gt.f32.partialorder %v3384_v17, %v3332_v9  ;;  %v2183_v61 = vsel %vm1667_vm7, 1.0, %v2754_v14 }
0x1296   :  { %2723 = vtanh.f32 %v1564_v23  ;;  %v3412_v23 = vsel %vm1727_vm11, 1.0, %v2754_v14  ;;  %vm1723_vm11 = vcmp.ge.f32.partialorder %v3363_v27, %v3342_v63  ;;  %v3461_v32 = vsel %vm1711_vm10, 1.0, %v2754_v14 }
0x1297   :  { %2725 = vpow2.f32 %v2160_v62  ;;  %v2197_v35 = vsel %vm1723_vm11, 1.0, %v2754_v14 }
0x12a0   :  { %v2724_v26 = vpop.eup %2723 }
0x12a1   :  { %1567 = vrot.lane.b32.xlu1 %v2724_v26, %s2755_s21  ;;  %v2726_v5 = vpop.eup %2725  ;;  %v3419_v26 = vsel %vm1731_vm12, 1.0, %v2754_v14  ;;  %vm1739_vm12 = vcmp.gt.f32.partialorder %v3384_v17, %v3342_v63 }
0x12a2   :  { %v1548_v13 = vadd.f32 1.0, %v2726_v5  ;;  %v3473_v38 = vsel %vm1739_vm12, 1.0, %v2754_v14 }
0x12a4   :  { %2727 = vrcp.f32 %v1548_v13 }
0x12ae   :  { %v2728_v34 = vpop.eup %2727 }
0x1313   :  { %v1568_v54 = vpop.permute.xlu1 %1567 }
0x1314   :  { %v1570_v36 = vmul.f32 %v2728_v34, %v1568_v54 }
0x1316   :  { %v3470_v37 = vsel %vm70_vm0, %v3129_v19, %v1570_v36  ;;  %v3498_v10 = vsel %vm70_vm0, %v1570_v36, %v3129_v19 }
0x1317   :  { %vm1579_vm3 = vcmp.gt.f32.partialorder %v3363_v27, %v3470_v37  ;;  %vm1583_vm4 = vcmp.gt.f32.partialorder %v3337_v12, %v3470_v37  ;;  %vm1587_vm5 = vcmp.gt.f32.partialorder %v3327_v8, %v3470_v37  ;;  %vm1591_vm7 = vcmp.gt.f32.partialorder %v3332_v9, %v3470_v37 }
0x1318   :  { %v2161_v39 = vsel %vm1579_vm3, 1.0, %v2754_v14  ;;  %v2162_v40 = vsel %vm1583_vm4, 1.0, %v2754_v14  ;;  %v2163_v24 = vsel %vm1587_vm5, 1.0, %v2754_v14  ;;  %vm1595_vm8 = vcmp.gt.f32.partialorder %v3342_v63, %v3470_v37 }
0x1319   :  { %v1586_v15 = vadd.f32 %v2162_v40, %v2161_v39  ;;  %vm1607_vm9 = vcmp.ge.f32.partialorder %v3470_v37, %v3363_v27  ;;  %vm1599_vm0 = vcmp.gt.f32.partialorder %v3384_v17, %v3470_v37  ;;  %vm1635_vm10 = vcmp.ge.f32.partialorder %v3470_v37, %v3337_v12 }
0x131a   :  { %v2168_v25 = vsel %vm1607_vm9, 1.0, %v2754_v14  ;;  %v2164_v28 = vsel %vm1591_vm7, 1.0, %v2754_v14  ;;  %vm1603_vm11 = vcmp.gt.f32.partialorder %v3498_v10, %v3470_v37  ;;  %v2175_v43 = vsel %vm1635_vm10, 1.0, %v2754_v14 }
0x131b   :  { %v1590_v19 = vadd.f32 %v2163_v24, %v1586_v15  ;;  %v1614_v41 = vadd.f32 %v2169_v30, %v2168_v25  ;;  %v2165_v45 = vsel %vm1595_vm8, 1.0, %v2754_v14  ;;  %v1642_v46 = vadd.f32 %v2176_v55, %v2175_v43 }
0x131c   :  { %vm1663_vm12 = vcmp.ge.f32.partialorder %v3470_v37, %v3327_v8  ;;  %v2166_v47 = vsel %vm1599_vm0, 1.0, %v2754_v14  ;;  %vm1691_vm13 = vcmp.ge.f32.partialorder %v3470_v37, %v3332_v9  ;;  %v2167_v56 = vsel %vm1603_vm11, 1.0, %v2754_v14 }
0x131d   :  { %v1594_v44 = vadd.f32 %v2164_v28, %v1590_v19  ;;  %v1618_v51 = vadd.f32 %v2170_v31, %v1614_v41  ;;  %v2182_v52 = vsel %vm1663_vm12, 1.0, %v2754_v14  ;;  %v1646_v57 = vadd.f32 %v3366_v1, %v1642_v46 }
0x131e   :  { %v1670_v59 = vadd.f32 %v2183_v61, %v2182_v52  ;;  %vm1631_vm14 = vcmp.gt.f32.partialorder %v3498_v10, %v3363_v27  ;;  %v2189_v5 = vsel %vm1691_vm13, 1.0, %v2754_v14  ;;  %vm1719_vm15 = vcmp.ge.f32.partialorder %v3470_v37, %v3342_v63 }
0x131f   :  { %v1598_v53 = vadd.f32 %v2165_v45, %v1594_v44  ;;  %v1622_v62 = vadd.f32 %v2171_v33, %v1618_v51  ;;  %v1650_v13 = vadd.f32 %v3373_v16, %v1646_v57  ;;  %vm1659_vm2 = vcmp.gt.f32.partialorder %v3498_v10, %v3337_v12 }
0x1320   :  { %v1674_v30 = vadd.f32 %v3398_v22, %v1670_v59  ;;  %v1698_v31 = vadd.f32 %v2190_v4, %v2189_v5  ;;  %vm1687_vm3 = vcmp.gt.f32.partialorder %v3498_v10, %v3327_v8  ;;  %vm1715_vm4 = vcmp.gt.f32.partialorder %v3498_v10, %v3332_v9 }
0x1321   :  { %v1602_v34 = vadd.f32 %v2166_v47, %v1598_v53  ;;  %v2196_v1 = vsel %vm1719_vm15, 1.0, %v2754_v14  ;;  %v1626_v33 = vadd.f32 %v3438_v48, %v1622_v62  ;;  %v1654_v54 = vadd.f32 %v3387_v20, %v1650_v13 }
0x1322   :  { %v1678_v16 = vadd.f32 %v3355_v50, %v1674_v30  ;;  %v1702_v55 = vadd.f32 %v3406_v58, %v1698_v31  ;;  %v2174_v22 = vsel %vm1631_vm14, 1.0, %v2754_v14  ;;  %v2181_v36 = vsel %vm1659_vm2, 1.0, %v2754_v14 }
0x1323   :  { %v1726_v61 = vadd.f32 %v2197_v35, %v2196_v1  ;;  %vm1747_vm5 = vcmp.ge.f32.partialorder %v3470_v37, %v3384_v17  ;;  %v2188_v39 = vsel %vm1687_vm3, 1.0, %v2754_v14  ;;  %v2195_v50 = vsel %vm1715_vm4, 1.0, %v2754_v14 }
0x1324   :  { %v1682_v4 = vadd.f32 %v3401_v7, %v1678_v16  ;;  %v1706_v48 = vadd.f32 %v3358_v29, %v1702_v55  ;;  %v2203_v20 = vsel %vm1747_vm5, 1.0, %v2754_v14  ;;  %vm1743_vm6 = vcmp.gt.f32.partialorder %v3498_v10, %v3342_v63 }
0x1325   :  { %v1730_v58 = vadd.f32 %v3412_v23, %v1726_v61  ;;  %v1754_v35 = vadd.f32 %v3476_v3, %v2203_v20  ;;  %v1606_v40 = vadd.f32 %v2167_v56, %v1602_v34  ;;  %v1630_v15 = vadd.f32 %v3441_v49, %v1626_v33 }
0x1326   :  { %v1658_v7 = vadd.f32 %v3449_v60, %v1654_v54  ;;  %v1710_v24 = vadd.f32 %v3409_v11, %v1706_v48  ;;  %vm1775_vm7 = vcmp.ge.f32.partialorder %v3470_v37, %v3498_v10  ;;  %vm1779_vm8 = vcmp.ge.f32.partialorder %v3363_v27, %v3498_v10 }
0x1327   :  { %v1734_v29 = vadd.f32 %v3419_v26, %v1730_v58  ;;  %v1758_v19 = vadd.f32 %v3491_v0, %v1754_v35  ;;  %v1686_v23 = vadd.f32 %v3457_v2, %v1682_v4  ;;  %v2210_v49 = vsel %vm1775_vm7, 1.0, %v2754_v14  ;;  %v1939_v35 = vld [vmem:[%s3744_s4 + $0xf0] sm:$0xff] }
0x1328   :  { %v1714_v3 = vadd.f32 %v3461_v32, %v1710_v24  ;;  %v2211_v60 = vsel %vm1779_vm8, 1.0, %v2754_v14  ;;  %vm1783_vm9 = vcmp.ge.f32.partialorder %v3337_v12, %v3498_v10  ;;  %v1634_v0 = vadd.f32 %v2174_v22, %v1630_v15  ;;  %v1923_v15 = vld [vmem:[%s3744_s4 + $0x70] sm:$0xff] }
0x1329   :  { %v1738_v11 = vadd.f32 %v3422_v21, %v1734_v29  ;;  %v1762_v26 = vadd.f32 %v3494_v6, %v1758_v19  ;;  %v1782_v25 = vadd.f32 %v2211_v60, %v2210_v49  ;;  %v1662_v28 = vadd.f32 %v2181_v36, %v1658_v7  ;;  %v1924_v29 = vld [vmem:[%s3744_s4 + $0x78] sm:$0xff] }
0x132a   :  { %v2212_v41 = vsel %vm1783_vm9, 1.0, %v2754_v14  ;;  %vm1787_vm0 = vcmp.ge.f32.partialorder %v3327_v8, %v3498_v10  ;;  %vm1791_vm10 = vcmp.ge.f32.partialorder %v3332_v9, %v3498_v10  ;;  %v3586_v21 = vadd.f32 %v2188_v39, %v1686_v23 }
0x132b   :  { %v1742_v2 = vadd.f32 %v3473_v38, %v1738_v11  ;;  %v1766_v32 = vadd.f32 %v3503_v18, %v1762_v26  ;;  %v1786_v43 = vadd.f32 %v2212_v41, %v1782_v25  ;;  %v3588_v6 = vadd.f32 %v2195_v50, %v1714_v3  ;;  %v2019_v25 = vld [vmem:[%s3746_s6] sm:$0xff] }
0x132c   :  { %vm1771_vm11 = vcmp.gt.f32.partialorder %v3498_v10, %v3384_v17  ;;  %v2213_v44 = vsel %vm1787_vm0, 1.0, %v2754_v14  ;;  %vm1795_vm12 = vcmp.ge.f32.partialorder %v3342_v63, %v3498_v10  ;;  %vm1803_vm13 = vcmp.lt.f32.partialorder %v1606_v40, 2.0  ;;  %v1940_v40 = vld [vmem:[%s3744_s4 + $0xf8] sm:$0xff] }
0x132d   :  { %v1770_v45 = vadd.f32 %v3511_v42, %v1766_v32  ;;  %v1790_v46 = vadd.f32 %v2213_v44, %v1786_v43  ;;  %v2202_v38 = vsel %vm1743_vm6, 1.0, %v2754_v14  ;;  %v2214_v18 = vsel %vm1791_vm10, 1.0, %v2754_v14  ;;  %v2022_v32 = vld [vmem:[%s3746_s6 + $0x18] sm:$0xff] }
0x132e   :  { %vm1799_vm14 = vcmp.ge.f32.partialorder %v3384_v17, %v3498_v10  ;;  %vm1804_vm15 = vcmp.lt.f32.partialorder %v1634_v0, 2.0  ;;  %v3603_v47 = vadd.f32 %v2202_v38, %v1742_v2  ;;  %v2209_v42 = vsel %vm1771_vm11, 1.0, %v2754_v14  ;;  %v2021_v2 = vld [vmem:[%s3746_s6 + $0x10] sm:$0xff] }
0x132f   :  { %v1794_v51 = vadd.f32 %v2214_v18, %v1790_v46  ;;  %vm1805_vm2 = vcmp.lt.f32.partialorder %v1662_v28, 2.0  ;;  %v3606_v52 = vadd.f32 %v2209_v42, %v1770_v45  ;;  %v2215_v53 = vsel %vm1795_vm12, 1.0, %v2754_v14 }
0x1330   :  { %v2217_v56 = vsel %vm1803_vm13, 1.0, %v2754_v14  ;;  %v2218_v57 = vsel %vm1804_vm15, 1.0, %v2754_v14  ;;  %v2216_v59 = vsel %vm1799_vm14, 1.0, %v2754_v14  ;;  %vm1806_vm3 = vcmp.lt.f32.partialorder %v3586_v21, 2.0 }
0x1331   :  { %vm1807_vm4 = vcmp.lt.f32.partialorder %v3588_v6, 2.0  ;;  %v1824_v62 = vadd.f32 %v2218_v57, %v2217_v56  ;;  %v1798_v5 = vadd.f32 %v2215_v53, %v1794_v51  ;;  %v2219_v13 = vsel %vm1805_vm2, 1.0, %v2754_v14 }
0x1332   :  { %vm1868_vm5 = vcmp.eq.f32.partialorder %v2217_v56, 1.0  ;;  %v1813_v30 = vsel %vm1803_vm13, %v3470_v37, 0.0  ;;  %vm1808_vm6 = vcmp.lt.f32.partialorder %v3603_v47, 2.0  ;;  %vm1818_vm9 = vcmp.eq.f32.partialorder %v2217_v56, 0.0 }
0x1333   :  { %v1831_v31 = vadd.f32 %v2219_v13, %v1824_v62  ;;  %vm1869_vm7 = vmand %vm1804_vm15, %vm1868_vm5  ;;  %vm1872_vm8 = vcmp.eq.f32.partialorder %v1824_v62, 1.0  ;;  %vm1809_vm0 = vcmp.lt.f32.partialorder %v3606_v52, 2.0  ;;  %v2220_v34 = vsel %vm1806_vm3, 1.0, %v2754_v14  ;;  %v2025_v13 = vld [vmem:[%s3746_s6 + $0x30] sm:$0xff] }
0x1334   :  { %v2221_v1 = vsel %vm1807_vm4, 1.0, %v2754_v14  ;;  %vm1873_vm10 = vmand %vm1805_vm2, %vm1872_vm8  ;;  %vm1825_vm11 = vcmp.eq.f32.partialorder %v1824_v62, 0.0  ;;  %v1870_v33 = vsel %vm1869_vm7, %v3363_v27, 0.0  ;;  %v1802_v16 = vadd.f32 %v2216_v59, %v1798_v5  ;;  %v2024_v5 = vld [vmem:[%s3746_s6 + $0x28] sm:$0xff] }
0x1335   :  { %v1838_v37 = vadd.f32 %v2220_v34, %v1831_v31  ;;  %v1874_v54 = vsel %vm1873_vm10, %v3337_v12, 0.0  ;;  %vm1876_vm12 = vcmp.eq.f32.partialorder %v1831_v31, 1.0  ;;  %vm1819_vm13 = vmand %vm1804_vm15, %vm1818_vm9  ;;  %v2222_v55 = vsel %vm1808_vm6, 1.0, %v2754_v14 }
0x1336   :  { %v1875_v22 = vadd.f32 %v1874_v54, %v1870_v33  ;;  %vm1877_vm14 = vmand %vm1806_vm3, %vm1876_vm12  ;;  %v1820_v36 = vsel %vm1819_vm13, %v3363_v27, 0.0  ;;  %v2223_v48 = vsel %vm1809_vm0, 1.0, %v2754_v14  ;;  %vm1832_vm8 = vcmp.eq.f32.partialorder %v1831_v31, 0.0  ;;  %v2026_v31 = vld [vmem:[%s3746_s6 + $0x38] sm:$0xff] }
0x1337   :  { %v1845_v61 = vadd.f32 %v2221_v1, %v1838_v37  ;;  %v1878_v4 = vsel %vm1877_vm14, %v3327_v8, 0.0  ;;  %vm1880_vm5 = vcmp.eq.f32.partialorder %v1838_v37, 1.0  ;;  %v1821_v39 = vadd.f32 %v1820_v36, %v1813_v30  ;;  %vm1826_vm7 = vmand %vm1805_vm2, %vm1825_vm11 }
0x1338   :  { %v1879_v20 = vadd.f32 %v1878_v4, %v1875_v22  ;;  %vm1881_vm15 = vmand %vm1807_vm4, %vm1880_vm5  ;;  %v1827_v50 = vsel %vm1826_vm7, %v3337_v12, 0.0  ;;  %vm1810_vm2 = vcmp.lt.f32.partialorder %v1802_v16, 2.0  ;;  %v2574_v24 = vpack.c.bf16 %v1940_v40, %v1939_v35  ;;  %v2225_v22 = vld [vmem:[%s3747_s7] ss:$0 sm:$0xff] }
0x1339   :  { %v1852_v27 = vadd.f32 %v2222_v55, %v1845_v61  ;;  %v1882_v58 = vsel %vm1881_vm15, %v3332_v9, 0.0  ;;  %vm1884_vm9 = vcmp.eq.f32.partialorder %v1845_v61, 1.0  ;;  %v1828_v7 = vadd.f32 %v1827_v50, %v1821_v39  ;;  %vm1833_vm13 = vmand %vm1806_vm3, %vm1832_vm8 }
0x133a   :  { %v1883_v12 = vadd.f32 %v1882_v58, %v1879_v20  ;;  %vm1885_vm10 = vmand %vm1808_vm6, %vm1884_vm9  ;;  %vm1839_vm11 = vcmp.eq.f32.partialorder %v1838_v37, 0.0  ;;  %v2576_v3 = vpack.c.bf16 %v1924_v29, %v1923_v15  ;;  %2575 = vmatprep.subr.bf16.mxu0 %v2574_v24  ;;  %v1834_v60 = vsel %vm1833_vm13, %v3327_v8, 0.0  ;;  %v2020_v8 = vld [vmem:[%s3746_s6 + $0x8] sm:$0xff]  ;;  %v2224_v37 = vld [vmem:[%s3745_s5] ss:$0 sm:$0xff] }
0x133b   :  { %v1859_v19 = vadd.f32 %v2223_v48, %v1852_v27  ;;  %v1886_v23 = vsel %vm1885_vm10, %v3342_v63, 0.0  ;;  %vm1888_vm12 = vcmp.eq.f32.partialorder %v1852_v27, 1.0  ;;  %vm1846_vm5 = vcmp.eq.f32.partialorder %v1845_v61, 0.0  ;;  %vm1840_vm10 = vmand %vm1807_vm4, %vm1839_vm11 }
0x133c   :  { %v1887_v49 = vadd.f32 %v1886_v23, %v1883_v12  ;;  %vm1889_vm14 = vmand %vm1809_vm0, %vm1888_vm12  ;;  %vm1853_vm7 = vcmp.eq.f32.partialorder %v1852_v27, 0.0  ;;  %2577 = vmatpush3.bf16.msra.mxu0 %v2576_v3  ;;  %v1835_v26 = vadd.f32 %v1834_v60, %v1828_v7  ;;  %v1841_v28 = vsel %vm1840_vm10, %v3332_v9, 0.0 }
0x133d   :  { %v1890_v11 = vsel %vm1889_vm14, %v3384_v17, 0.0  ;;  %vm1892_vm15 = vcmp.eq.f32.partialorder %v1859_v19, 1.0  ;;  %vm1860_vm9 = vcmp.eq.f32.partialorder %v1859_v19, 0.0  ;;  %v2579_v41 = vpack.c.bf16 %v2020_v8, %v2019_v25  ;;  %vm1847_vm8 = vmand %vm1808_vm6, %vm1846_vm5 }
0x133e   :  { %v1891_v0 = vadd.f32 %v1890_v11, %v1887_v49  ;;  %vm1893_vm3 = vmand %vm1810_vm2, %vm1892_vm15  ;;  %v1842_v6 = vadd.f32 %v1841_v28, %v1835_v26  ;;  %v2756_v44 = vmov 0.0|0.0   ;;  %v2582_v46 = vpack.c.bf16 %v2022_v32, %v2021_v2 }
0x133f   :  { %v1894_v43 = vsel %vm1893_vm3, %v3498_v10, 0.0  ;;  %vm3690_vm4 = vmand %vm1810_vm2, %vm1860_vm9  ;;  %2578 = vmatprep.subr.bf16.mxu1 %v2756_v44  ;;  %v1848_v38 = vsel %vm1847_vm8, %v3342_v63, 0.0  ;;  %vm2757_vm6 = vmmov 0   ;;  %v2588_v34 = vpack.c.bf16 %v2026_v31, %v2025_v13 }
0x1340   :  { %v1895_v9 = vadd.f32 %v1894_v43, %v1891_v0  ;;  %v1862_v45 = vsel %vm3690_vm4, %v3498_v10, 0.0  ;;  %2580 = vmatpush3.bf16.msra.mxu1 %v2579_v41  ;;  %vm1854_vm2 = vmand %vm1809_vm0, %vm1853_vm7  ;;  %v1849_v42 = vadd.f32 %v1848_v38, %v1842_v6  ;;  %2287 = vmatprep.mubr.msk.f32.mxu1 %vm2757_vm6, %v2754_v14  ;;  %vm2107_vm0 = vcmask 25600  }
0x1341   :  { %2581 = vmatprep.subr.bf16.mxu1 %v2756_v44  ;;  %v1855_v51 = vsel %vm1854_vm2, %v3384_v17, 0.0  ;;  %v2023_v17 = vld [vmem:[%s3746_s6 + $0x20] sm:$0xff] }
0x1342   :  { %v1903_v18 = vrot.slane %v1895_v9, 2  ;;  %v1856_v47 = vadd.f32 %v1855_v51, %v1849_v42  ;;  %v2585_v30 = vpack.c.bf16 %v2024_v5, %v2023_v17 }
0x1344   :  { %v2628_v53 = vpack.i.bf16 %v1895_v9, %v1903_v18  ;;  %2583 = vmatpush3.bf16.msra.mxu1 %v2582_v46  ;;  %v1863_v10 = vadd.f32 %v1862_v45, %v1856_v47 }
0x1345   :  { %2584 = vmatprep.subr.bf16.mxu1 %v2756_v44 }
0x1346   :  { %2629 = vrot.lane.b32.xlu0 %v2628_v53, %s2755_s21  ;;  %v1901_v63 = vrot.slane %v1863_v10, 2 }
0x1348   :  { %2586 = vmatpush3.bf16.msra.mxu1 %v2585_v30 }
0x1349   :  { %2587 = vmatprep.subr.bf16.mxu1 %v2756_v44 }
0x134c   :  { %2589 = vmatpush3.bf16.msra.mxu1 %v2588_v34 }
0x13b8   :  { %v2630_v56 = vpop.permute.xlu0 %2629 }
0x13b9   :  { %v2632_v57 = vunpack.i.h.bf16 %v2630_v56  ;;  %v2631_v59 = vunpack.i.l.bf16 %v2630_v56 }
0x13bb   :  { %v1908_v62 = vsel %vm83_vm1, %v1901_v63, %v2631_v59  ;;  %v1907_v52 = vsel %vm83_vm1, %v1863_v10, %v2632_v57 }
0x13bc   :  { %2012 = vmatprep.mubr.f32.mxu0 %v1908_v62 }
0x13bd   :  { %2013 = vmatmul.mubr.f32.vlgmr.msra.gmra.mrb[8].mxu0 %v1907_v52 }
0x1490   :  { %v2259_v1 = vpop.f32.mrb[8].mxu0 }
0x1491   :  { %v2260_v33 = vpop.f32.mrb[9].mxu0 }
0x1492   :  { %v2261_v54 = vadd.f32 %v2260_v33, %v2259_v1 }
0x1494   :  { %v2015_v16 = vadd.f32 %v2261_v54, %v2224_v37 }
0x1496   :  { %v2018_v55 = vmax.f32 %v2015_v16, 0.0 }
0x1498   :  { %2288 = vmatmul.mubr.msk.f32.vlgmr.msra.gmra.mrb[8].mxu1 %vm83_vm1, %v2018_v55 }
0x156b   :  { %v2103_v14 = vpop.f32.mrb[8].mxu1 }
0x156c   :  { %v2104_v36 = vadd.f32 %v2225_v22, %v2103_v14  ;;  %v2289_v61 = vpop.f32.mrb[9].mxu1 }
0x156e   :  { %2108 = vst.msk [vmem:[#allocation2] sm:$0x3] %vm2107_vm0, %v2104_v36 }
0x156f   :  { %2740 = shalt.err (!%p2737_p4)
}
0x1570   :  { %s2741_s28 = scalar_lea.hbm %s3748_s8, 32 }
0x1571   :  { %p2742_p5 = scmp.ne.s32.totalorder %s3748_s8, %s2741_s28  ;;  %p2745_p6 = scmp.lt.u32.totalorder %s2741_s28, %s3748_s8 }
0x1573   :  { %p2747_p7 = pnand %p2745_p6, %p2742_p5 }
0x1575   :  { %2750 = shalt.err (!%p2747_p7)
}
0x1576   :  { %2118 = dma.vmem_to_hbm [thread:$0]  %s2116_s25, 32, %s3748_s8, [#allocation3]  }
0x1577   :  { %2751 = dma.done.wait [#allocation3], 32  }
0x1578   :  { %2752 = vsyncadd [#allocation3], 4294967264 }
0x1579   :  { %2122 = vsyncpa [#allocation3], 1 }

</bundles_post_ra>
